<compile_context>
chip_gen: v5e
topology: v5e:2x2
jax: 0.10.0
libtpu: 0.0.40
codegen_flags: <defaults>
</compile_context>

<pallas_src>
import math
import functools

import jax
import jax.numpy as jnp
from jax import lax
from jax.experimental import pallas as pl
from jax.experimental.pallas import tpu as pltpu


_VMEM_BUDGET = 28 * 1024 * 1024   # target per-call working set (fits v5e/v6e/v7x)
_VMEM_LIMIT = 40 * 1024 * 1024    # explicit scoped-VMEM limit (> 16/32 MiB defaults)


def _pick_tile(dim: int, target: int, unit: int = 8) -> int:
    """Row tile <= target: prefer a multiple-of-`unit` divisor of dim (no ragged block);
    otherwise fall back to an aligned tile with a ragged, Pallas-padded final block."""
    target = max(unit, int(target))
    if dim <= target:
        return dim
    aligned = target - (target % unit)
    t = aligned
    while t >= max(unit, aligned // 2):
        if dim % t == 0:
            return t
        t -= unit
    return aligned


# ---------------------------------------------------------------------------
# Kernel 1: single projection with layout fold  (S, B, D) f32 -> (B, S, N) bf16
# ---------------------------------------------------------------------------
def _proj_kernel(x_ref, w_ref, b_ref, o_ref, *, batch, scale):
    w = w_ref[...]                                   # (D, N) bf16, resident
    bias = b_ref[...]                                # (1, N) f32
    for b in range(batch):                           # static & small
        xb = x_ref[:, b, :].astype(jnp.bfloat16)     # load per-batch rows straight from ref
        y = jnp.dot(xb, w, preferred_element_type=jnp.float32) + bias
        if scale != 1.0:                             # fold softmax scale into Q here
            y = y * scale
        o_ref[b] = y.astype(o_ref.dtype)             # contiguous (ts, N) store


def pallas_project(x, w, bias, *, scale=1.0, seq_tile=256):
    """x: (S, B, D) f32, w: (D, N), bias: (1, N) -> (B, S, N) bf16."""
    S, B, D = x.shape
    N = w.shape[1]
    fixed = 2 * D * N * 2 + 2 * N * 4                        # resident weight (x2 buf) + bias
    per_row = 2 * max(B, 8) * D * 4 + 2 * B * N * 2          # f32 in (x2, sublane-pad) + bf16 out (x2)
    max_rows = max(8, (_VMEM_BUDGET - fixed) // per_row) if _VMEM_BUDGET > fixed else 8
    ts = _pick_tile(S, min(seq_tile, max_rows))
    return pl.pallas_call(
        functools.partial(_proj_kernel, batch=B, scale=float(scale)),
        grid=(pl.cdiv(S, ts),),
        in_specs=[pl.BlockSpec((ts, B, D), lambda i: (i, 0, 0)),
                  pl.BlockSpec((D, N), lambda i: (0, 0)),
                  pl.BlockSpec((1, N), lambda i: (0, 0))],
        out_specs=pl.BlockSpec((B, ts, N), lambda i: (0, i, 0)),
        out_shape=jax.ShapeDtypeStruct((B, S, N), jnp.bfloat16),
        compiler_params=pltpu.CompilerParams(
            dimension_semantics=("parallel",), vmem_limit_bytes=_VMEM_LIMIT),
    )(x, w.astype(jnp.bfloat16), bias)


# ---------------------------------------------------------------------------
# Kernel 2: flash-style attention (online softmax), q/k/v: (B, S, D) bf16
# ---------------------------------------------------------------------------
def _flash_attn_kernel(q_ref, k_ref, v_ref, o_ref, m_sc, l_sc, acc_sc, *, heads, seq_len):
    ki = pl.program_id(2)

    @pl.when(ki == 0)
    def _():
        m_sc[...] = jnp.full(m_sc.shape, -1e30, dtype=m_sc.dtype)
        l_sc[...] = jnp.zeros(l_sc.shape, dtype=l_sc.dtype)
        acc_sc[...] = jnp.zeros(acc_sc.shape, dtype=acc_sc.dtype)

    tq, D = q_ref.shape
    tk = k_ref.shape[0]
    dk = D // heads

    ragged_k = (seq_len % tk) != 0                   # static: mask only if a ragged K tail exists
    if ragged_k:
        col = lax.broadcasted_iota(jnp.int32, (tq, tk), 1)
        kmask = (ki * tk + col) < seq_len

    for h in range(heads):                           # static & small; temps die per head
        sl = slice(h * dk, (h + 1) * dk)
        qh = q_ref[:, sl]                            # (tq, dk) bf16 (scale already folded in)
        kh = k_ref[:, sl]
        vh = v_ref[:, sl]
        # q @ k^T: contract last dims of both operands (no transpose materialized).
        s = lax.dot_general(qh, kh, (((1,), (1,)), ((), ())),
                            preferred_element_type=jnp.float32)        # (tq, tk) f32
        if ragged_k:
            s = jnp.where(kmask, s, -1e30)
        m_prev = m_sc[h]                                               # (tq, 1)
        m_new = jnp.maximum(m_prev, jnp.max(s, axis=-1, keepdims=True))
        alpha = jnp.exp(m_prev - m_new)
        p = jnp.exp(s - m_new)                                         # f32 softmax numerator
        l_sc[h] = alpha * l_sc[h] + jnp.sum(p, axis=-1, keepdims=True)
        pv = lax.dot_general(p.astype(vh.dtype), vh, (((1,), (0,)), ((), ())),
                             preferred_element_type=jnp.float32)       # (tq, dk) f32
        acc_sc[:, sl] = alpha * acc_sc[:, sl] + pv
        m_sc[h] = m_new

    @pl.when(ki == pl.num_programs(2) - 1)
    def _():
        for h in range(heads):
            sl = slice(h * dk, (h + 1) * dk)
            inv = 1.0 / l_sc[h]                      # exact (tq, 1) reciprocal in f32
            o_ref[:, sl] = (acc_sc[:, sl] * inv).astype(o_ref.dtype)


def pallas_flash_attention(q, k, v, *, heads, block_q=256, block_k=256):
    """q/k/v: (B, S, D) bf16 (q pre-scaled) -> (B, S, D) bf16."""
    B, S, D = q.shape
    per_row = 20 * D + 1024 * heads                  # rough bytes/tile-row incl. double buffers
    t_max = max(8, _VMEM_BUDGET // per_row)
    tq = _pick_tile(S, min(block_q, t_max))
    tk = _pick_tile(S, min(block_k, t_max))
    grid = (B, pl.cdiv(S, tq), pl.cdiv(S, tk))

    q_spec = pl.BlockSpec((None, tq, D), lambda b, qi, ki: (b, qi, 0))
    kv_spec = pl.BlockSpec((None, tk, D), lambda b, qi, ki: (b, ki, 0))
    o_spec = pl.BlockSpec((None, tq, D), lambda b, qi, ki: (b, qi, 0))

    return pl.pallas_call(
        functools.partial(_flash_attn_kernel, heads=heads, seq_len=S),
        grid=grid,
        in_specs=[q_spec, kv_spec, kv_spec],
        out_specs=o_spec,
        out_shape=jax.ShapeDtypeStruct((B, S, D), jnp.bfloat16),
        scratch_shapes=[pltpu.VMEM((heads, tq, 1), jnp.float32),   # running max m
                        pltpu.VMEM((heads, tq, 1), jnp.float32),   # running denom l
                        pltpu.VMEM((tq, D), jnp.float32)],         # output accumulator
        compiler_params=pltpu.CompilerParams(
            dimension_semantics=("parallel", "parallel", "arbitrary"),
            vmem_limit_bytes=_VMEM_LIMIT),
    )(q, k, v)


# ---------------------------------------------------------------------------
# Kernel 3: output projection with the (B,S,D)->(S,B,D) transpose folded in
# ---------------------------------------------------------------------------
def _out_proj_kernel(x_ref, w_ref, b_ref, o_ref, *, batch, d_out):
    w = w_ref[...]                                   # (D, N) bf16, resident
    bias = b_ref[...]                                # (1, N) f32
    for b in range(batch):
        y = jnp.dot(x_ref[b], w, preferred_element_type=jnp.float32) + bias
        # lane-dense column-slice store: row s, columns [b*N, (b+1)*N) of (ts, B*N)
        o_ref[:, b * d_out:(b + 1) * d_out] = y.astype(o_ref.dtype)


def pallas_output_project(x, w, bias, *, seq_tile=256):
    """x: (B, S, D) bf16 -> (S, B, N) f32, y = x @ W + b; no XLA transpose afterwards."""
    B, S, D = x.shape
    N = w.shape[1]
    fixed = 2 * D * N * 2 + 2 * N * 4
    per_row = 2 * B * D * 2 + 2 * B * N * 4          # bf16 in (x2) + f32 out (x2)
    max_rows = max(8, (_VMEM_BUDGET - fixed) // per_row) if _VMEM_BUDGET > fixed else 8
    ts = _pick_tile(S, min(seq_tile, max_rows))
    out = pl.pallas_call(
        functools.partial(_out_proj_kernel, batch=B, d_out=N),
        grid=(pl.cdiv(S, ts),),
        in_specs=[pl.BlockSpec((B, ts, D), lambda i: (0, i, 0)),
                  pl.BlockSpec((D, N), lambda i: (0, 0)),
                  pl.BlockSpec((1, N), lambda i: (0, 0))],
        out_specs=pl.BlockSpec((ts, B * N), lambda i: (i, 0)),
        out_shape=jax.ShapeDtypeStruct((S, B * N), jnp.float32),
        compiler_params=pltpu.CompilerParams(
            dimension_semantics=("parallel",), vmem_limit_bytes=_VMEM_LIMIT),
    )(x, w.astype(jnp.bfloat16), bias)
    return out.reshape(S, B, N)                      # free reshape (row-major)


# ---------------------------------------------------------------------------
# Full module forward
# ---------------------------------------------------------------------------
def multi_head_attention(query, key, value, params, *, heads):
    """query/key/value: (seq, batch, d_model) f32 -> (seq, batch, d_model) f32."""
    S, B, D = query.shape
    dk = D // heads
    scale = 1.0 / math.sqrt(dk)

    q = pallas_project(query, params["wq"], params["bq"], scale=scale)  # (B,S,D) bf16, pre-scaled
    k = pallas_project(key,   params["wk"], params["bk"])               # (B,S,D) bf16
    v = pallas_project(value, params["wv"], params["bv"])               # (B,S,D) bf16
    o = pallas_flash_attention(q, k, v, heads=heads)                    # (B,S,D) bf16
    # dropout is identity at inference
    return pallas_output_project(o, params["wo"], params["bo"])         # (S,B,D) f32


# ---------------------------------------------------------------------------
# Pure-JAX reference (mirrors the PyTorch forward, all f32)
# ---------------------------------------------------------------------------
def reference_mha(query, key, value, params, *, heads):
    S, B, D = query.shape
    dk = D // heads
    scale = 1.0 / math.sqrt(dk)

    def project(x, w, b):
        return (x.reshape(S * B, D) @ w + b).reshape(S, B, heads, dk)

    q = project(query, params["wq"], params["bq"])
    k = project(key,   params["wk"], params["bk"])
    v = project(value, params["wv"], params["bv"])
    scores = jnp.einsum("ibhd,jbhd->ijbh", q, k) * scale
    attn = jax.nn.softmax(scores, axis=1)
    x = jnp.einsum("ijbh,jbhd->ibhd", attn, v).reshape(S, B, D)
    return (x.reshape(S * B, D) @ params["wo"] + params["bo"]).reshape(S, B, D)


def init_params(key, d_model, heads):
    ks = jax.random.split(key, 8)
    bound = 1.0 / math.sqrt(d_model)

    def u(k, shape):
        return jax.random.uniform(k, shape, jnp.float32, -bound, bound)

    return {
        "wq": u(ks[0], (d_model, d_model)), "bq": u(ks[1], (1, d_model)),
        "wk": u(ks[2], (d_model, d_model)), "bk": u(ks[3], (1, d_model)),
        "wv": u(ks[4], (d_model, d_model)), "bv": u(ks[5], (1, d_model)),
        "wo": u(ks[6], (d_model, d_model)), "bo": u(ks[7], (1, d_model)),
    }


if __name__ == "__main__":
    seq_len, batch, d_model, heads = 8, 2, 32, 4

    root = jax.random.PRNGKey(0)
    kq, kk, kv, kp = jax.random.split(root, 4)
    query = jax.random.normal(kq, (seq_len, batch, d_model), jnp.float32)
    key_ = jax.random.normal(kk, (seq_len, batch, d_model), jnp.float32)
    value = jax.random.normal(kv, (seq_len, batch, d_model), jnp.float32)
    params = init_params(kp, d_model, heads)

    fwd = jax.jit(functools.partial(multi_head_attention, heads=heads))
    out = jax.block_until_ready(fwd(query, key_, value, params))

    ref = reference_mha(query, key_, value, params, heads=heads)
    assert out.shape == (seq_len, batch, d_model)
    # bf16 MXU operands + bf16 inter-kernel activations -> relaxed tolerance vs f32 reference
    assert jnp.allclose(out, ref, atol=5e-2, rtol=5e-2), "mismatch vs reference"

    print("KERNEL_OK")
</pallas_src>

<mosaic_0001>
module attributes {stable_mosaic.version = 11 : i64} {
  func.func @_proj_kernel(%arg0: i32, %arg1: memref<8x2x32xf32, #tpu.memory_space<vmem>>, %arg2: memref<32x32xbf16, #tpu.memory_space<vmem>>, %arg3: memref<1x32xf32, #tpu.memory_space<vmem>>, %arg4: memref<2x8x32xbf16, #tpu.memory_space<vmem>>) attributes {dimension_semantics = [#tpu.dimension_semantics<parallel>], iteration_bounds = array<i64: 1>, scalar_prefetch = 0 : i64, scratch_operands = 0 : i64, tpu.core_type = #tpu.core_type<tc>, window_params = [{transform_indices = @transform_0, window_bounds = array<i64: 8, 2, 32>}, {pipeline_mode = #tpu.pipeline_mode<synchronous>, transform_indices = @transform_1, window_bounds = array<i64: 32, 32>}, {pipeline_mode = #tpu.pipeline_mode<synchronous>, transform_indices = @transform_2, window_bounds = array<i64: 1, 32>}, {transform_indices = @transform_3, window_bounds = array<i64: 2, 8, 32>}]} {
    %c0 = arith.constant 0 : index
    %c0_0 = arith.constant 0 : index
    %0 = vector.load %arg2[%c0, %c0_0] : memref<32x32xbf16, #tpu.memory_space<vmem>>, vector<32x32xbf16>
    %c0_1 = arith.constant 0 : index
    %c0_2 = arith.constant 0 : index
    %1 = vector.load %arg3[%c0_1, %c0_2] : memref<1x32xf32, #tpu.memory_space<vmem>>, vector<1x32xf32>
    %c0_3 = arith.constant 0 : index
    %c0_4 = arith.constant 0 : index
    %c0_5 = arith.constant 0 : index
    %2 = vector.load %arg1[%c0_3, %c0_4, %c0_5] : memref<8x2x32xf32, #tpu.memory_space<vmem>>, vector<8x1x32xf32>
    %3 = vector.shape_cast %2 : vector<8x1x32xf32> to vector<8x32xf32>
    %4 = arith.truncf %3 : vector<8x32xf32> to vector<8x32xbf16>
    %cst = arith.constant dense<0.000000e+00> : vector<8x32xf32>
    %5 = tpu.matmul %4, %0, %cst {dimension_numbers = #tpu.dot_dimension_numbers<[1], [0], [0], [1], [0, 0, 1, 1], [], []>} : vector<8x32xbf16>, vector<32x32xbf16>, vector<8x32xf32> -> vector<8x32xf32>
    %6 = vector.broadcast %1 : vector<1x32xf32> to vector<8x32xf32>
    %7 = arith.addf %5, %6 : vector<8x32xf32>
    %8 = arith.truncf %7 : vector<8x32xf32> to vector<8x32xbf16>
    %c0_6 = arith.constant 0 : index
    %c0_7 = arith.constant 0 : index
    %c0_8 = arith.constant 0 : index
    %9 = vector.load %arg4[%c0_6, %c0_7, %c0_8] : memref<2x8x32xbf16, #tpu.memory_space<vmem>>, vector<1x8x32xbf16>
    %10 = vector.shape_cast %9 : vector<1x8x32xbf16> to vector<8x32xbf16>
    %11 = vector.shape_cast %8 : vector<8x32xbf16> to vector<1x8x32xbf16>
    tpu.vector_store %arg4[%c0_6, %c0_7, %c0_8], %11 {strides = array<i32>} : memref<2x8x32xbf16, #tpu.memory_space<vmem>>, vector<1x8x32xbf16>,
    %c0_9 = arith.constant 0 : index
    %c1 = arith.constant 1 : index
    %c0_10 = arith.constant 0 : index
    %12 = vector.load %arg1[%c0_9, %c1, %c0_10] : memref<8x2x32xf32, #tpu.memory_space<vmem>>, vector<8x1x32xf32>
    %13 = vector.shape_cast %12 : vector<8x1x32xf32> to vector<8x32xf32>
    %14 = arith.truncf %13 : vector<8x32xf32> to vector<8x32xbf16>
    %cst_11 = arith.constant dense<0.000000e+00> : vector<8x32xf32>
    %15 = tpu.matmul %14, %0, %cst_11 {dimension_numbers = #tpu.dot_dimension_numbers<[1], [0], [0], [1], [0, 0, 1, 1], [], []>} : vector<8x32xbf16>, vector<32x32xbf16>, vector<8x32xf32> -> vector<8x32xf32>
    %16 = vector.broadcast %1 : vector<1x32xf32> to vector<8x32xf32>
    %17 = arith.addf %15, %16 : vector<8x32xf32>
    %18 = arith.truncf %17 : vector<8x32xf32> to vector<8x32xbf16>
    %c1_12 = arith.constant 1 : index
    %c0_13 = arith.constant 0 : index
    %c0_14 = arith.constant 0 : index
    %19 = vector.load %arg4[%c1_12, %c0_13, %c0_14] : memref<2x8x32xbf16, #tpu.memory_space<vmem>>, vector<1x8x32xbf16>
    %20 = vector.shape_cast %19 : vector<1x8x32xbf16> to vector<8x32xbf16>
    %21 = vector.shape_cast %18 : vector<8x32xbf16> to vector<1x8x32xbf16>
    tpu.vector_store %arg4[%c1_12, %c0_13, %c0_14], %21 {strides = array<i32>} : memref<2x8x32xbf16, #tpu.memory_space<vmem>>, vector<1x8x32xbf16>,
    return
  }
  func.func @transform_0(%arg0: i32) -> (i32, i32, i32) {
    %c0_i32 = arith.constant 0 : i32
    %c0_i32_0 = arith.constant 0 : i32
    %c0_i32_1 = arith.constant 0 : i32
    return %arg0, %c0_i32, %c0_i32_0 : i32, i32, i32
  }
  func.func @transform_1(%arg0: i32) -> (i32, i32) {
    %c0_i32 = arith.constant 0 : i32
    %c0_i32_0 = arith.constant 0 : i32
    %c0_i32_1 = arith.constant 0 : i32
    return %c0_i32, %c0_i32_0 : i32, i32
  }
  func.func @transform_2(%arg0: i32) -> (i32, i32) {
    %c0_i32 = arith.constant 0 : i32
    %c0_i32_0 = arith.constant 0 : i32
    %c0_i32_1 = arith.constant 0 : i32
    return %c0_i32, %c0_i32_0 : i32, i32
  }
  func.func @transform_3(%arg0: i32) -> (i32, i32, i32) {
    %c0_i32 = arith.constant 0 : i32
    %c0_i32_0 = arith.constant 0 : i32
    %c0_i32_1 = arith.constant 0 : i32
    return %c0_i32, %arg0, %c0_i32_0 : i32, i32, i32
  }
}

module attributes {stable_mosaic.version = 11 : i64} {
  func.func @_proj_kernel(%arg0: i32, %arg1: memref<8x2x32xf32, #tpu.memory_space<vmem>>, %arg2: memref<32x32xbf16, #tpu.memory_space<vmem>>, %arg3: memref<1x32xf32, #tpu.memory_space<vmem>>, %arg4: memref<2x8x32xbf16, #tpu.memory_space<vmem>>) attributes {dimension_semantics = [#tpu.dimension_semantics<parallel>], iteration_bounds = array<i64: 1>, scalar_prefetch = 0 : i64, scratch_operands = 0 : i64, tpu.core_type = #tpu.core_type<tc>, window_params = [{transform_indices = @transform_0, window_bounds = array<i64: 8, 2, 32>}, {pipeline_mode = #tpu.pipeline_mode<synchronous>, transform_indices = @transform_1, window_bounds = array<i64: 32, 32>}, {pipeline_mode = #tpu.pipeline_mode<synchronous>, transform_indices = @transform_2, window_bounds = array<i64: 1, 32>}, {transform_indices = @transform_3, window_bounds = array<i64: 2, 8, 32>}]} {
    %c0 = arith.constant 0 : index
    %c0_0 = arith.constant 0 : index
    %0 = vector.load %arg2[%c0, %c0_0] : memref<32x32xbf16, #tpu.memory_space<vmem>>, vector<32x32xbf16>
    %c0_1 = arith.constant 0 : index
    %c0_2 = arith.constant 0 : index
    %1 = vector.load %arg3[%c0_1, %c0_2] : memref<1x32xf32, #tpu.memory_space<vmem>>, vector<1x32xf32>
    %c0_3 = arith.constant 0 : index
    %c0_4 = arith.constant 0 : index
    %c0_5 = arith.constant 0 : index
    %2 = vector.load %arg1[%c0_3, %c0_4, %c0_5] : memref<8x2x32xf32, #tpu.memory_space<vmem>>, vector<8x1x32xf32>
    %3 = vector.shape_cast %2 : vector<8x1x32xf32> to vector<8x32xf32>
    %4 = arith.truncf %3 : vector<8x32xf32> to vector<8x32xbf16>
    %cst = arith.constant dense<0.000000e+00> : vector<8x32xf32>
    %5 = tpu.matmul %4, %0, %cst {dimension_numbers = #tpu.dot_dimension_numbers<[1], [0], [0], [1], [0, 0, 1, 1], [], []>} : vector<8x32xbf16>, vector<32x32xbf16>, vector<8x32xf32> -> vector<8x32xf32>
    %6 = vector.broadcast %1 : vector<1x32xf32> to vector<8x32xf32>
    %7 = arith.addf %5, %6 : vector<8x32xf32>
    %cst_6 = arith.constant 0.353553385 : f32
    %8 = vector.broadcast %cst_6 : f32 to vector<8x32xf32>
    %9 = arith.mulf %7, %8 : vector<8x32xf32>
    %10 = arith.truncf %9 : vector<8x32xf32> to vector<8x32xbf16>
    %c0_7 = arith.constant 0 : index
    %c0_8 = arith.constant 0 : index
    %c0_9 = arith.constant 0 : index
    %11 = vector.load %arg4[%c0_7, %c0_8, %c0_9] : memref<2x8x32xbf16, #tpu.memory_space<vmem>>, vector<1x8x32xbf16>
    %12 = vector.shape_cast %11 : vector<1x8x32xbf16> to vector<8x32xbf16>
    %13 = vector.shape_cast %10 : vector<8x32xbf16> to vector<1x8x32xbf16>
    tpu.vector_store %arg4[%c0_7, %c0_8, %c0_9], %13 {strides = array<i32>} : memref<2x8x32xbf16, #tpu.memory_space<vmem>>, vector<1x8x32xbf16>,
    %c0_10 = arith.constant 0 : index
    %c1 = arith.constant 1 : index
    %c0_11 = arith.constant 0 : index
    %14 = vector.load %arg1[%c0_10, %c1, %c0_11] : memref<8x2x32xf32, #tpu.memory_space<vmem>>, vector<8x1x32xf32>
    %15 = vector.shape_cast %14 : vector<8x1x32xf32> to vector<8x32xf32>
    %16 = arith.truncf %15 : vector<8x32xf32> to vector<8x32xbf16>
    %cst_12 = arith.constant dense<0.000000e+00> : vector<8x32xf32>
    %17 = tpu.matmul %16, %0, %cst_12 {dimension_numbers = #tpu.dot_dimension_numbers<[1], [0], [0], [1], [0, 0, 1, 1], [], []>} : vector<8x32xbf16>, vector<32x32xbf16>, vector<8x32xf32> -> vector<8x32xf32>
    %18 = vector.broadcast %1 : vector<1x32xf32> to vector<8x32xf32>
    %19 = arith.addf %17, %18 : vector<8x32xf32>
    %cst_13 = arith.constant 0.353553385 : f32
    %20 = vector.broadcast %cst_13 : f32 to vector<8x32xf32>
    %21 = arith.mulf %19, %20 : vector<8x32xf32>
    %22 = arith.truncf %21 : vector<8x32xf32> to vector<8x32xbf16>
    %c1_14 = arith.constant 1 : index
    %c0_15 = arith.constant 0 : index
    %c0_16 = arith.constant 0 : index
    %23 = vector.load %arg4[%c1_14, %c0_15, %c0_16] : memref<2x8x32xbf16, #tpu.memory_space<vmem>>, vector<1x8x32xbf16>
    %24 = vector.shape_cast %23 : vector<1x8x32xbf16> to vector<8x32xbf16>
    %25 = vector.shape_cast %22 : vector<8x32xbf16> to vector<1x8x32xbf16>
    tpu.vector_store %arg4[%c1_14, %c0_15, %c0_16], %25 {strides = array<i32>} : memref<2x8x32xbf16, #tpu.memory_space<vmem>>, vector<1x8x32xbf16>,
    return
  }
  func.func @transform_0(%arg0: i32) -> (i32, i32, i32) {
    %c0_i32 = arith.constant 0 : i32
    %c0_i32_0 = arith.constant 0 : i32
    %c0_i32_1 = arith.constant 0 : i32
    return %arg0, %c0_i32, %c0_i32_0 : i32, i32, i32
  }
  func.func @transform_1(%arg0: i32) -> (i32, i32) {
    %c0_i32 = arith.constant 0 : i32
    %c0_i32_0 = arith.constant 0 : i32
    %c0_i32_1 = arith.constant 0 : i32
    return %c0_i32, %c0_i32_0 : i32, i32
  }
  func.func @transform_2(%arg0: i32) -> (i32, i32) {
    %c0_i32 = arith.constant 0 : i32
    %c0_i32_0 = arith.constant 0 : i32
    %c0_i32_1 = arith.constant 0 : i32
    return %c0_i32, %c0_i32_0 : i32, i32
  }
  func.func @transform_3(%arg0: i32) -> (i32, i32, i32) {
    %c0_i32 = arith.constant 0 : i32
    %c0_i32_0 = arith.constant 0 : i32
    %c0_i32_1 = arith.constant 0 : i32
    return %c0_i32, %arg0, %c0_i32_0 : i32, i32, i32
  }
}

module attributes {stable_mosaic.version = 11 : i64} {
  func.func @_out_proj_kernel(%arg0: i32, %arg1: memref<2x8x32xbf16, #tpu.memory_space<vmem>>, %arg2: memref<32x32xbf16, #tpu.memory_space<vmem>>, %arg3: memref<1x32xf32, #tpu.memory_space<vmem>>, %arg4: memref<8x64xf32, #tpu.memory_space<vmem>>) attributes {dimension_semantics = [#tpu.dimension_semantics<parallel>], iteration_bounds = array<i64: 1>, scalar_prefetch = 0 : i64, scratch_operands = 0 : i64, tpu.core_type = #tpu.core_type<tc>, window_params = [{transform_indices = @transform_0, window_bounds = array<i64: 2, 8, 32>}, {pipeline_mode = #tpu.pipeline_mode<synchronous>, transform_indices = @transform_1, window_bounds = array<i64: 32, 32>}, {pipeline_mode = #tpu.pipeline_mode<synchronous>, transform_indices = @transform_2, window_bounds = array<i64: 1, 32>}, {transform_indices = @transform_3, window_bounds = array<i64: 8, 64>}]} {
    %c0 = arith.constant 0 : index
    %c0_0 = arith.constant 0 : index
    %0 = vector.load %arg2[%c0, %c0_0] : memref<32x32xbf16, #tpu.memory_space<vmem>>, vector<32x32xbf16>
    %c0_1 = arith.constant 0 : index
    %c0_2 = arith.constant 0 : index
    %1 = vector.load %arg3[%c0_1, %c0_2] : memref<1x32xf32, #tpu.memory_space<vmem>>, vector<1x32xf32>
    %c0_3 = arith.constant 0 : index
    %c0_4 = arith.constant 0 : index
    %c0_5 = arith.constant 0 : index
    %2 = vector.load %arg1[%c0_3, %c0_4, %c0_5] : memref<2x8x32xbf16, #tpu.memory_space<vmem>>, vector<1x8x32xbf16>
    %3 = vector.shape_cast %2 : vector<1x8x32xbf16> to vector<8x32xbf16>
    %cst = arith.constant dense<0.000000e+00> : vector<8x32xf32>
    %4 = tpu.matmul %3, %0, %cst {dimension_numbers = #tpu.dot_dimension_numbers<[1], [0], [0], [1], [0, 0, 1, 1], [], []>} : vector<8x32xbf16>, vector<32x32xbf16>, vector<8x32xf32> -> vector<8x32xf32>
    %5 = vector.broadcast %1 : vector<1x32xf32> to vector<8x32xf32>
    %6 = arith.addf %4, %5 : vector<8x32xf32>
    %c0_6 = arith.constant 0 : index
    %c0_7 = arith.constant 0 : index
    %7 = vector.load %arg4[%c0_6, %c0_7] : memref<8x64xf32, #tpu.memory_space<vmem>>, vector<8x32xf32>
    tpu.vector_store %arg4[%c0_6, %c0_7], %6 {strides = array<i32>} : memref<8x64xf32, #tpu.memory_space<vmem>>, vector<8x32xf32>,
    %c1 = arith.constant 1 : index
    %c0_8 = arith.constant 0 : index
    %c0_9 = arith.constant 0 : index
    %8 = vector.load %arg1[%c1, %c0_8, %c0_9] : memref<2x8x32xbf16, #tpu.memory_space<vmem>>, vector<1x8x32xbf16>
    %9 = vector.shape_cast %8 : vector<1x8x32xbf16> to vector<8x32xbf16>
    %cst_10 = arith.constant dense<0.000000e+00> : vector<8x32xf32>
    %10 = tpu.matmul %9, %0, %cst_10 {dimension_numbers = #tpu.dot_dimension_numbers<[1], [0], [0], [1], [0, 0, 1, 1], [], []>} : vector<8x32xbf16>, vector<32x32xbf16>, vector<8x32xf32> -> vector<8x32xf32>
    %11 = vector.broadcast %1 : vector<1x32xf32> to vector<8x32xf32>
    %12 = arith.addf %10, %11 : vector<8x32xf32>
    %c0_11 = arith.constant 0 : index
    %c32 = arith.constant 32 : index
    %13 = vector.load %arg4[%c0_11, %c32] : memref<8x64xf32, #tpu.memory_space<vmem>>, vector<8x32xf32>
    tpu.vector_store %arg4[%c0_11, %c32], %12 {strides = array<i32>} : memref<8x64xf32, #tpu.memory_space<vmem>>, vector<8x32xf32>,
    return
  }
  func.func @transform_0(%arg0: i32) -> (i32, i32, i32) {
    %c0_i32 = arith.constant 0 : i32
    %c0_i32_0 = arith.constant 0 : i32
    %c0_i32_1 = arith.constant 0 : i32
    return %c0_i32, %arg0, %c0_i32_0 : i32, i32, i32
  }
  func.func @transform_1(%arg0: i32) -> (i32, i32) {
    %c0_i32 = arith.constant 0 : i32
    %c0_i32_0 = arith.constant 0 : i32
    %c0_i32_1 = arith.constant 0 : i32
    return %c0_i32, %c0_i32_0 : i32, i32
  }
  func.func @transform_2(%arg0: i32) -> (i32, i32) {
    %c0_i32 = arith.constant 0 : i32
    %c0_i32_0 = arith.constant 0 : i32
    %c0_i32_1 = arith.constant 0 : i32
    return %c0_i32, %c0_i32_0 : i32, i32
  }
  func.func @transform_3(%arg0: i32) -> (i32, i32) {
    %c0_i32 = arith.constant 0 : i32
    %c0_i32_0 = arith.constant 0 : i32
    return %arg0, %c0_i32 : i32, i32
  }
}

module attributes {stable_mosaic.version = 11 : i64} {
  func.func @_flash_attn_kernel(%arg0: i32, %arg1: i32, %arg2: i32, %arg3: memref<1x8x32xbf16, #tpu.memory_space<vmem>>, %arg4: memref<1x8x32xbf16, #tpu.memory_space<vmem>>, %arg5: memref<1x8x32xbf16, #tpu.memory_space<vmem>>, %arg6: memref<1x8x32xbf16, #tpu.memory_space<vmem>>, %arg7: memref<4x8x1xf32, #tpu.memory_space<vmem>>, %arg8: memref<4x8x1xf32, #tpu.memory_space<vmem>>, %arg9: memref<8x32xf32, #tpu.memory_space<vmem>>) attributes {dimension_semantics = [#tpu.dimension_semantics<parallel>, #tpu.dimension_semantics<parallel>, #tpu.dimension_semantics<arbitrary>], iteration_bounds = array<i64: 2, 1, 1>, scalar_prefetch = 0 : i64, scratch_operands = 3 : i64, tpu.core_type = #tpu.core_type<tc>, window_params = [{transform_indices = @transform_0, window_bounds = array<i64: 1, 8, 32>}, {transform_indices = @transform_1, window_bounds = array<i64: 1, 8, 32>}, {transform_indices = @transform_2, window_bounds = array<i64: 1, 8, 32>}, {transform_indices = @transform_3, window_bounds = array<i64: 1, 8, 32>}]} {
    %c0_i32 = arith.constant 0 : i32
    %0 = arith.cmpi eq, %arg2, %c0_i32 : i32
    %1 = arith.extui %0 : i1 to i32
    %c0_i32_0 = arith.constant 0 : i32
    %2 = arith.cmpi ne, %1, %c0_i32_0 : i32
    scf.if %2 {
      %cst_111 = arith.constant -1.000000e+30 : f32
      %150 = vector.broadcast %cst_111 : f32 to vector<4x8x1xf32>
      %c0_112 = arith.constant 0 : index
      %c0_113 = arith.constant 0 : index
      %c0_114 = arith.constant 0 : index
      %151 = vector.load %arg7[%c0_112, %c0_113, %c0_114] : memref<4x8x1xf32, #tpu.memory_space<vmem>>, vector<4x8x1xf32>
      tpu.vector_store %arg7[%c0_112, %c0_113, %c0_114], %150 {strides = array<i32>} : memref<4x8x1xf32, #tpu.memory_space<vmem>>, vector<4x8x1xf32>,
      %cst_115 = arith.constant 0.000000e+00 : f32
      %152 = vector.broadcast %cst_115 : f32 to vector<4x8x1xf32>
      %c0_116 = arith.constant 0 : index
      %c0_117 = arith.constant 0 : index
      %c0_118 = arith.constant 0 : index
      %153 = vector.load %arg8[%c0_116, %c0_117, %c0_118] : memref<4x8x1xf32, #tpu.memory_space<vmem>>, vector<4x8x1xf32>
      tpu.vector_store %arg8[%c0_116, %c0_117, %c0_118], %152 {strides = array<i32>} : memref<4x8x1xf32, #tpu.memory_space<vmem>>, vector<4x8x1xf32>,
      %cst_119 = arith.constant 0.000000e+00 : f32
      %154 = vector.broadcast %cst_119 : f32 to vector<8x32xf32>
      %c0_120 = arith.constant 0 : index
      %c0_121 = arith.constant 0 : index
      %155 = vector.load %arg9[%c0_120, %c0_121] : memref<8x32xf32, #tpu.memory_space<vmem>>, vector<8x32xf32>
      tpu.vector_store %arg9[%c0_120, %c0_121], %154 {strides = array<i32>} : memref<8x32xf32, #tpu.memory_space<vmem>>, vector<8x32xf32>,
    } else {
    }
    %c0 = arith.constant 0 : index
    %c0_1 = arith.constant 0 : index
    %c0_2 = arith.constant 0 : index
    %3 = vector.load %arg3[%c0, %c0_1, %c0_2] : memref<1x8x32xbf16, #tpu.memory_space<vmem>>, vector<1x8x8xbf16>
    %4 = vector.shape_cast %3 : vector<1x8x8xbf16> to vector<8x8xbf16>
    %c0_3 = arith.constant 0 : index
    %c0_4 = arith.constant 0 : index
    %c0_5 = arith.constant 0 : index
    %5 = vector.load %arg4[%c0_3, %c0_4, %c0_5] : memref<1x8x32xbf16, #tpu.memory_space<vmem>>, vector<1x8x8xbf16>
    %6 = vector.shape_cast %5 : vector<1x8x8xbf16> to vector<8x8xbf16>
    %c0_6 = arith.constant 0 : index
    %c0_7 = arith.constant 0 : index
    %c0_8 = arith.constant 0 : index
    %7 = vector.load %arg5[%c0_6, %c0_7, %c0_8] : memref<1x8x32xbf16, #tpu.memory_space<vmem>>, vector<1x8x8xbf16>
    %8 = vector.shape_cast %7 : vector<1x8x8xbf16> to vector<8x8xbf16>
    %cst = arith.constant dense<0.000000e+00> : vector<8x8xf32>
    %9 = tpu.matmul %4, %6, %cst {dimension_numbers = #tpu.dot_dimension_numbers<[1], [1], [0], [0], [0, 0, 1, 0], [], []>} : vector<8x8xbf16>, vector<8x8xbf16>, vector<8x8xf32> -> vector<8x8xf32>
    %c0_9 = arith.constant 0 : index
    %c0_10 = arith.constant 0 : index
    %c0_11 = arith.constant 0 : index
    %10 = vector.load %arg7[%c0_9, %c0_10, %c0_11] : memref<4x8x1xf32, #tpu.memory_space<vmem>>, vector<1x8x1xf32>
    %11 = vector.shape_cast %10 : vector<1x8x1xf32> to vector<8x1xf32>
    %cst_12 = arith.constant dense<0xFF800000> : vector<8xf32>
    %12 = vector.multi_reduction <maximumf>, %9, %cst_12 [1] : vector<8x8xf32> to vector<8xf32>
    %13 = vector.shape_cast %12 : vector<8xf32> to vector<8x1xf32>
    %14 = arith.maximumf %11, %13 : vector<8x1xf32>
    %15 = arith.subf %11, %14 : vector<8x1xf32>
    %16 = math.exp %15 : vector<8x1xf32>
    %17 = vector.broadcast %14 : vector<8x1xf32> to vector<8x8xf32>
    %18 = arith.subf %9, %17 : vector<8x8xf32>
    %19 = math.exp %18 : vector<8x8xf32>
    %c0_13 = arith.constant 0 : index
    %c0_14 = arith.constant 0 : index
    %c0_15 = arith.constant 0 : index
    %20 = vector.load %arg8[%c0_13, %c0_14, %c0_15] : memref<4x8x1xf32, #tpu.memory_space<vmem>>, vector<1x8x1xf32>
    %21 = vector.shape_cast %20 : vector<1x8x1xf32> to vector<8x1xf32>
    %22 = arith.mulf %16, %21 : vector<8x1xf32>
    %cst_16 = arith.constant dense<0.000000e+00> : vector<8xf32>
    %23 = vector.multi_reduction <add>, %19, %cst_16 [1] : vector<8x8xf32> to vector<8xf32>
    %24 = vector.shape_cast %23 : vector<8xf32> to vector<8x1xf32>
    %25 = arith.addf %22, %24 : vector<8x1xf32>
    %c0_17 = arith.constant 0 : index
    %c0_18 = arith.constant 0 : index
    %c0_19 = arith.constant 0 : index
    %26 = vector.load %arg8[%c0_17, %c0_18, %c0_19] : memref<4x8x1xf32, #tpu.memory_space<vmem>>, vector<1x8x1xf32>
    %27 = vector.shape_cast %26 : vector<1x8x1xf32> to vector<8x1xf32>
    %28 = vector.shape_cast %25 : vector<8x1xf32> to vector<1x8x1xf32>
    tpu.vector_store %arg8[%c0_17, %c0_18, %c0_19], %28 {strides = array<i32>} : memref<4x8x1xf32, #tpu.memory_space<vmem>>, vector<1x8x1xf32>,
    %29 = arith.truncf %19 : vector<8x8xf32> to vector<8x8xbf16>
    %cst_20 = arith.constant dense<0.000000e+00> : vector<8x8xf32>
    %30 = tpu.matmul %29, %8, %cst_20 {dimension_numbers = #tpu.dot_dimension_numbers<[1], [0], [0], [1], [0, 0, 1, 1], [], []>} : vector<8x8xbf16>, vector<8x8xbf16>, vector<8x8xf32> -> vector<8x8xf32>
    %c0_21 = arith.constant 0 : index
    %c0_22 = arith.constant 0 : index
    %31 = vector.load %arg9[%c0_21, %c0_22] : memref<8x32xf32, #tpu.memory_space<vmem>>, vector<8x8xf32>
    %32 = vector.broadcast %16 : vector<8x1xf32> to vector<8x8xf32>
    %33 = arith.mulf %32, %31 : vector<8x8xf32>
    %34 = arith.addf %33, %30 : vector<8x8xf32>
    %c0_23 = arith.constant 0 : index
    %c0_24 = arith.constant 0 : index
    %35 = vector.load %arg9[%c0_23, %c0_24] : memref<8x32xf32, #tpu.memory_space<vmem>>, vector<8x8xf32>
    tpu.vector_store %arg9[%c0_23, %c0_24], %34 {strides = array<i32>} : memref<8x32xf32, #tpu.memory_space<vmem>>, vector<8x8xf32>,
    %c0_25 = arith.constant 0 : index
    %c0_26 = arith.constant 0 : index
    %c0_27 = arith.constant 0 : index
    %36 = vector.load %arg7[%c0_25, %c0_26, %c0_27] : memref<4x8x1xf32, #tpu.memory_space<vmem>>, vector<1x8x1xf32>
    %37 = vector.shape_cast %36 : vector<1x8x1xf32> to vector<8x1xf32>
    %38 = vector.shape_cast %14 : vector<8x1xf32> to vector<1x8x1xf32>
    tpu.vector_store %arg7[%c0_25, %c0_26, %c0_27], %38 {strides = array<i32>} : memref<4x8x1xf32, #tpu.memory_space<vmem>>, vector<1x8x1xf32>,
    %c0_28 = arith.constant 0 : index
    %c0_29 = arith.constant 0 : index
    %c8 = arith.constant 8 : index
    %39 = vector.load %arg3[%c0_28, %c0_29, %c8] : memref<1x8x32xbf16, #tpu.memory_space<vmem>>, vector<1x8x8xbf16>
    %40 = vector.shape_cast %39 : vector<1x8x8xbf16> to vector<8x8xbf16>
    %c0_30 = arith.constant 0 : index
    %c0_31 = arith.constant 0 : index
    %c8_32 = arith.constant 8 : index
    %41 = vector.load %arg4[%c0_30, %c0_31, %c8_32] : memref<1x8x32xbf16, #tpu.memory_space<vmem>>, vector<1x8x8xbf16>
    %42 = vector.shape_cast %41 : vector<1x8x8xbf16> to vector<8x8xbf16>
    %c0_33 = arith.constant 0 : index
    %c0_34 = arith.constant 0 : index
    %c8_35 = arith.constant 8 : index
    %43 = vector.load %arg5[%c0_33, %c0_34, %c8_35] : memref<1x8x32xbf16, #tpu.memory_space<vmem>>, vector<1x8x8xbf16>
    %44 = vector.shape_cast %43 : vector<1x8x8xbf16> to vector<8x8xbf16>
    %cst_36 = arith.constant dense<0.000000e+00> : vector<8x8xf32>
    %45 = tpu.matmul %40, %42, %cst_36 {dimension_numbers = #tpu.dot_dimension_numbers<[1], [1], [0], [0], [0, 0, 1, 0], [], []>} : vector<8x8xbf16>, vector<8x8xbf16>, vector<8x8xf32> -> vector<8x8xf32>
    %c1 = arith.constant 1 : index
    %c0_37 = arith.constant 0 : index
    %c0_38 = arith.constant 0 : index
    %46 = vector.load %arg7[%c1, %c0_37, %c0_38] : memref<4x8x1xf32, #tpu.memory_space<vmem>>, vector<1x8x1xf32>
    %47 = vector.shape_cast %46 : vector<1x8x1xf32> to vector<8x1xf32>
    %cst_39 = arith.constant dense<0xFF800000> : vector<8xf32>
    %48 = vector.multi_reduction <maximumf>, %45, %cst_39 [1] : vector<8x8xf32> to vector<8xf32>
    %49 = vector.shape_cast %48 : vector<8xf32> to vector<8x1xf32>
    %50 = arith.maximumf %47, %49 : vector<8x1xf32>
    %51 = arith.subf %47, %50 : vector<8x1xf32>
    %52 = math.exp %51 : vector<8x1xf32>
    %53 = vector.broadcast %50 : vector<8x1xf32> to vector<8x8xf32>
    %54 = arith.subf %45, %53 : vector<8x8xf32>
    %55 = math.exp %54 : vector<8x8xf32>
    %c1_40 = arith.constant 1 : index
    %c0_41 = arith.constant 0 : index
    %c0_42 = arith.constant 0 : index
    %56 = vector.load %arg8[%c1_40, %c0_41, %c0_42] : memref<4x8x1xf32, #tpu.memory_space<vmem>>, vector<1x8x1xf32>
    %57 = vector.shape_cast %56 : vector<1x8x1xf32> to vector<8x1xf32>
    %58 = arith.mulf %52, %57 : vector<8x1xf32>
    %cst_43 = arith.constant dense<0.000000e+00> : vector<8xf32>
    %59 = vector.multi_reduction <add>, %55, %cst_43 [1] : vector<8x8xf32> to vector<8xf32>
    %60 = vector.shape_cast %59 : vector<8xf32> to vector<8x1xf32>
    %61 = arith.addf %58, %60 : vector<8x1xf32>
    %c1_44 = arith.constant 1 : index
    %c0_45 = arith.constant 0 : index
    %c0_46 = arith.constant 0 : index
    %62 = vector.load %arg8[%c1_44, %c0_45, %c0_46] : memref<4x8x1xf32, #tpu.memory_space<vmem>>, vector<1x8x1xf32>
    %63 = vector.shape_cast %62 : vector<1x8x1xf32> to vector<8x1xf32>
    %64 = vector.shape_cast %61 : vector<8x1xf32> to vector<1x8x1xf32>
    tpu.vector_store %arg8[%c1_44, %c0_45, %c0_46], %64 {strides = array<i32>} : memref<4x8x1xf32, #tpu.memory_space<vmem>>, vector<1x8x1xf32>,
    %65 = arith.truncf %55 : vector<8x8xf32> to vector<8x8xbf16>
    %cst_47 = arith.constant dense<0.000000e+00> : vector<8x8xf32>
    %66 = tpu.matmul %65, %44, %cst_47 {dimension_numbers = #tpu.dot_dimension_numbers<[1], [0], [0], [1], [0, 0, 1, 1], [], []>} : vector<8x8xbf16>, vector<8x8xbf16>, vector<8x8xf32> -> vector<8x8xf32>
    %c0_48 = arith.constant 0 : index
    %c8_49 = arith.constant 8 : index
    %67 = vector.load %arg9[%c0_48, %c8_49] : memref<8x32xf32, #tpu.memory_space<vmem>>, vector<8x8xf32>
    %68 = vector.broadcast %52 : vector<8x1xf32> to vector<8x8xf32>
    %69 = arith.mulf %68, %67 : vector<8x8xf32>
    %70 = arith.addf %69, %66 : vector<8x8xf32>
    %c0_50 = arith.constant 0 : index
    %c8_51 = arith.constant 8 : index
    %71 = vector.load %arg9[%c0_50, %c8_51] : memref<8x32xf32, #tpu.memory_space<vmem>>, vector<8x8xf32>
    tpu.vector_store %arg9[%c0_50, %c8_51], %70 {strides = array<i32>} : memref<8x32xf32, #tpu.memory_space<vmem>>, vector<8x8xf32>,
    %c1_52 = arith.constant 1 : index
    %c0_53 = arith.constant 0 : index
    %c0_54 = arith.constant 0 : index
    %72 = vector.load %arg7[%c1_52, %c0_53, %c0_54] : memref<4x8x1xf32, #tpu.memory_space<vmem>>, vector<1x8x1xf32>
    %73 = vector.shape_cast %72 : vector<1x8x1xf32> to vector<8x1xf32>
    %74 = vector.shape_cast %50 : vector<8x1xf32> to vector<1x8x1xf32>
    tpu.vector_store %arg7[%c1_52, %c0_53, %c0_54], %74 {strides = array<i32>} : memref<4x8x1xf32, #tpu.memory_space<vmem>>, vector<1x8x1xf32>,
    %c0_55 = arith.constant 0 : index
    %c0_56 = arith.constant 0 : index
    %c16 = arith.constant 16 : index
    %75 = vector.load %arg3[%c0_55, %c0_56, %c16] : memref<1x8x32xbf16, #tpu.memory_space<vmem>>, vector<1x8x8xbf16>
    %76 = vector.shape_cast %75 : vector<1x8x8xbf16> to vector<8x8xbf16>
    %c0_57 = arith.constant 0 : index
    %c0_58 = arith.constant 0 : index
    %c16_59 = arith.constant 16 : index
    %77 = vector.load %arg4[%c0_57, %c0_58, %c16_59] : memref<1x8x32xbf16, #tpu.memory_space<vmem>>, vector<1x8x8xbf16>
    %78 = vector.shape_cast %77 : vector<1x8x8xbf16> to vector<8x8xbf16>
    %c0_60 = arith.constant 0 : index
    %c0_61 = arith.constant 0 : index
    %c16_62 = arith.constant 16 : index
    %79 = vector.load %arg5[%c0_60, %c0_61, %c16_62] : memref<1x8x32xbf16, #tpu.memory_space<vmem>>, vector<1x8x8xbf16>
    %80 = vector.shape_cast %79 : vector<1x8x8xbf16> to vector<8x8xbf16>
    %cst_63 = arith.constant dense<0.000000e+00> : vector<8x8xf32>
    %81 = tpu.matmul %76, %78, %cst_63 {dimension_numbers = #tpu.dot_dimension_numbers<[1], [1], [0], [0], [0, 0, 1, 0], [], []>} : vector<8x8xbf16>, vector<8x8xbf16>, vector<8x8xf32> -> vector<8x8xf32>
    %c2 = arith.constant 2 : index
    %c0_64 = arith.constant 0 : index
    %c0_65 = arith.constant 0 : index
    %82 = vector.load %arg7[%c2, %c0_64, %c0_65] : memref<4x8x1xf32, #tpu.memory_space<vmem>>, vector<1x8x1xf32>
    %83 = vector.shape_cast %82 : vector<1x8x1xf32> to vector<8x1xf32>
    %cst_66 = arith.constant dense<0xFF800000> : vector<8xf32>
    %84 = vector.multi_reduction <maximumf>, %81, %cst_66 [1] : vector<8x8xf32> to vector<8xf32>
    %85 = vector.shape_cast %84 : vector<8xf32> to vector<8x1xf32>
    %86 = arith.maximumf %83, %85 : vector<8x1xf32>
    %87 = arith.subf %83, %86 : vector<8x1xf32>
    %88 = math.exp %87 : vector<8x1xf32>
    %89 = vector.broadcast %86 : vector<8x1xf32> to vector<8x8xf32>
    %90 = arith.subf %81, %89 : vector<8x8xf32>
    %91 = math.exp %90 : vector<8x8xf32>
    %c2_67 = arith.constant 2 : index
    %c0_68 = arith.constant 0 : index
    %c0_69 = arith.constant 0 : index
    %92 = vector.load %arg8[%c2_67, %c0_68, %c0_69] : memref<4x8x1xf32, #tpu.memory_space<vmem>>, vector<1x8x1xf32>
    %93 = vector.shape_cast %92 : vector<1x8x1xf32> to vector<8x1xf32>
    %94 = arith.mulf %88, %93 : vector<8x1xf32>
    %cst_70 = arith.constant dense<0.000000e+00> : vector<8xf32>
    %95 = vector.multi_reduction <add>, %91, %cst_70 [1] : vector<8x8xf32> to vector<8xf32>
    %96 = vector.shape_cast %95 : vector<8xf32> to vector<8x1xf32>
    %97 = arith.addf %94, %96 : vector<8x1xf32>
    %c2_71 = arith.constant 2 : index
    %c0_72 = arith.constant 0 : index
    %c0_73 = arith.constant 0 : index
    %98 = vector.load %arg8[%c2_71, %c0_72, %c0_73] : memref<4x8x1xf32, #tpu.memory_space<vmem>>, vector<1x8x1xf32>
    %99 = vector.shape_cast %98 : vector<1x8x1xf32> to vector<8x1xf32>
    %100 = vector.shape_cast %97 : vector<8x1xf32> to vector<1x8x1xf32>
    tpu.vector_store %arg8[%c2_71, %c0_72, %c0_73], %100 {strides = array<i32>} : memref<4x8x1xf32, #tpu.memory_space<vmem>>, vector<1x8x1xf32>,
    %101 = arith.truncf %91 : vector<8x8xf32> to vector<8x8xbf16>
    %cst_74 = arith.constant dense<0.000000e+00> : vector<8x8xf32>
    %102 = tpu.matmul %101, %80, %cst_74 {dimension_numbers = #tpu.dot_dimension_numbers<[1], [0], [0], [1], [0, 0, 1, 1], [], []>} : vector<8x8xbf16>, vector<8x8xbf16>, vector<8x8xf32> -> vector<8x8xf32>
    %c0_75 = arith.constant 0 : index
    %c16_76 = arith.constant 16 : index
    %103 = vector.load %arg9[%c0_75, %c16_76] : memref<8x32xf32, #tpu.memory_space<vmem>>, vector<8x8xf32>
    %104 = vector.broadcast %88 : vector<8x1xf32> to vector<8x8xf32>
    %105 = arith.mulf %104, %103 : vector<8x8xf32>
    %106 = arith.addf %105, %102 : vector<8x8xf32>
    %c0_77 = arith.constant 0 : index
    %c16_78 = arith.constant 16 : index
    %107 = vector.load %arg9[%c0_77, %c16_78] : memref<8x32xf32, #tpu.memory_space<vmem>>, vector<8x8xf32>
    tpu.vector_store %arg9[%c0_77, %c16_78], %106 {strides = array<i32>} : memref<8x32xf32, #tpu.memory_space<vmem>>, vector<8x8xf32>,
    %c2_79 = arith.constant 2 : index
    %c0_80 = arith.constant 0 : index
    %c0_81 = arith.constant 0 : index
    %108 = vector.load %arg7[%c2_79, %c0_80, %c0_81] : memref<4x8x1xf32, #tpu.memory_space<vmem>>, vector<1x8x1xf32>
    %109 = vector.shape_cast %108 : vector<1x8x1xf32> to vector<8x1xf32>
    %110 = vector.shape_cast %86 : vector<8x1xf32> to vector<1x8x1xf32>
    tpu.vector_store %arg7[%c2_79, %c0_80, %c0_81], %110 {strides = array<i32>} : memref<4x8x1xf32, #tpu.memory_space<vmem>>, vector<1x8x1xf32>,
    %c0_82 = arith.constant 0 : index
    %c0_83 = arith.constant 0 : index
    %c24 = arith.constant 24 : index
    %111 = vector.load %arg3[%c0_82, %c0_83, %c24] : memref<1x8x32xbf16, #tpu.memory_space<vmem>>, vector<1x8x8xbf16>
    %112 = vector.shape_cast %111 : vector<1x8x8xbf16> to vector<8x8xbf16>
    %c0_84 = arith.constant 0 : index
    %c0_85 = arith.constant 0 : index
    %c24_86 = arith.constant 24 : index
    %113 = vector.load %arg4[%c0_84, %c0_85, %c24_86] : memref<1x8x32xbf16, #tpu.memory_space<vmem>>, vector<1x8x8xbf16>
    %114 = vector.shape_cast %113 : vector<1x8x8xbf16> to vector<8x8xbf16>
    %c0_87 = arith.constant 0 : index
    %c0_88 = arith.constant 0 : index
    %c24_89 = arith.constant 24 : index
    %115 = vector.load %arg5[%c0_87, %c0_88, %c24_89] : memref<1x8x32xbf16, #tpu.memory_space<vmem>>, vector<1x8x8xbf16>
    %116 = vector.shape_cast %115 : vector<1x8x8xbf16> to vector<8x8xbf16>
    %cst_90 = arith.constant dense<0.000000e+00> : vector<8x8xf32>
    %117 = tpu.matmul %112, %114, %cst_90 {dimension_numbers = #tpu.dot_dimension_numbers<[1], [1], [0], [0], [0, 0, 1, 0], [], []>} : vector<8x8xbf16>, vector<8x8xbf16>, vector<8x8xf32> -> vector<8x8xf32>
    %c3 = arith.constant 3 : index
    %c0_91 = arith.constant 0 : index
    %c0_92 = arith.constant 0 : index
    %118 = vector.load %arg7[%c3, %c0_91, %c0_92] : memref<4x8x1xf32, #tpu.memory_space<vmem>>, vector<1x8x1xf32>
    %119 = vector.shape_cast %118 : vector<1x8x1xf32> to vector<8x1xf32>
    %cst_93 = arith.constant dense<0xFF800000> : vector<8xf32>
    %120 = vector.multi_reduction <maximumf>, %117, %cst_93 [1] : vector<8x8xf32> to vector<8xf32>
    %121 = vector.shape_cast %120 : vector<8xf32> to vector<8x1xf32>
    %122 = arith.maximumf %119, %121 : vector<8x1xf32>
    %123 = arith.subf %119, %122 : vector<8x1xf32>
    %124 = math.exp %123 : vector<8x1xf32>
    %125 = vector.broadcast %122 : vector<8x1xf32> to vector<8x8xf32>
    %126 = arith.subf %117, %125 : vector<8x8xf32>
    %127 = math.exp %126 : vector<8x8xf32>
    %c3_94 = arith.constant 3 : index
    %c0_95 = arith.constant 0 : index
    %c0_96 = arith.constant 0 : index
    %128 = vector.load %arg8[%c3_94, %c0_95, %c0_96] : memref<4x8x1xf32, #tpu.memory_space<vmem>>, vector<1x8x1xf32>
    %129 = vector.shape_cast %128 : vector<1x8x1xf32> to vector<8x1xf32>
    %130 = arith.mulf %124, %129 : vector<8x1xf32>
    %cst_97 = arith.constant dense<0.000000e+00> : vector<8xf32>
    %131 = vector.multi_reduction <add>, %127, %cst_97 [1] : vector<8x8xf32> to vector<8xf32>
    %132 = vector.shape_cast %131 : vector<8xf32> to vector<8x1xf32>
    %133 = arith.addf %130, %132 : vector<8x1xf32>
    %c3_98 = arith.constant 3 : index
    %c0_99 = arith.constant 0 : index
    %c0_100 = arith.constant 0 : index
    %134 = vector.load %arg8[%c3_98, %c0_99, %c0_100] : memref<4x8x1xf32, #tpu.memory_space<vmem>>, vector<1x8x1xf32>
    %135 = vector.shape_cast %134 : vector<1x8x1xf32> to vector<8x1xf32>
    %136 = vector.shape_cast %133 : vector<8x1xf32> to vector<1x8x1xf32>
    tpu.vector_store %arg8[%c3_98, %c0_99, %c0_100], %136 {strides = array<i32>} : memref<4x8x1xf32, #tpu.memory_space<vmem>>, vector<1x8x1xf32>,
    %137 = arith.truncf %127 : vector<8x8xf32> to vector<8x8xbf16>
    %cst_101 = arith.constant dense<0.000000e+00> : vector<8x8xf32>
    %138 = tpu.matmul %137, %116, %cst_101 {dimension_numbers = #tpu.dot_dimension_numbers<[1], [0], [0], [1], [0, 0, 1, 1], [], []>} : vector<8x8xbf16>, vector<8x8xbf16>, vector<8x8xf32> -> vector<8x8xf32>
    %c0_102 = arith.constant 0 : index
    %c24_103 = arith.constant 24 : index
    %139 = vector.load %arg9[%c0_102, %c24_103] : memref<8x32xf32, #tpu.memory_space<vmem>>, vector<8x8xf32>
    %140 = vector.broadcast %124 : vector<8x1xf32> to vector<8x8xf32>
    %141 = arith.mulf %140, %139 : vector<8x8xf32>
    %142 = arith.addf %141, %138 : vector<8x8xf32>
    %c0_104 = arith.constant 0 : index
    %c24_105 = arith.constant 24 : index
    %143 = vector.load %arg9[%c0_104, %c24_105] : memref<8x32xf32, #tpu.memory_space<vmem>>, vector<8x8xf32>
    tpu.vector_store %arg9[%c0_104, %c24_105], %142 {strides = array<i32>} : memref<8x32xf32, #tpu.memory_space<vmem>>, vector<8x8xf32>,
    %c3_106 = arith.constant 3 : index
    %c0_107 = arith.constant 0 : index
    %c0_108 = arith.constant 0 : index
    %144 = vector.load %arg7[%c3_106, %c0_107, %c0_108] : memref<4x8x1xf32, #tpu.memory_space<vmem>>, vector<1x8x1xf32>
    %145 = vector.shape_cast %144 : vector<1x8x1xf32> to vector<8x1xf32>
    %146 = vector.shape_cast %122 : vector<8x1xf32> to vector<1x8x1xf32>
    tpu.vector_store %arg7[%c3_106, %c0_107, %c0_108], %146 {strides = array<i32>} : memref<4x8x1xf32, #tpu.memory_space<vmem>>, vector<1x8x1xf32>,
    %c0_i32_109 = arith.constant 0 : i32
    %147 = arith.cmpi eq, %arg2, %c0_i32_109 : i32
    %148 = arith.extui %147 : i1 to i32
    %c0_i32_110 = arith.constant 0 : i32
    %149 = arith.cmpi ne, %148, %c0_i32_110 : i32
    scf.if %149 {
      %c0_111 = arith.constant 0 : index
      %c0_112 = arith.constant 0 : index
      %c0_113 = arith.constant 0 : index
      %150 = vector.load %arg8[%c0_111, %c0_112, %c0_113] : memref<4x8x1xf32, #tpu.memory_space<vmem>>, vector<1x8x1xf32>
      %151 = vector.shape_cast %150 : vector<1x8x1xf32> to vector<8x1xf32>
      %cst_114 = arith.constant 1.000000e+00 : f32
      %152 = vector.broadcast %cst_114 : f32 to vector<8x1xf32>
      %153 = arith.divf %152, %151 : vector<8x1xf32>
      %c0_115 = arith.constant 0 : index
      %c0_116 = arith.constant 0 : index
      %154 = vector.load %arg9[%c0_115, %c0_116] : memref<8x32xf32, #tpu.memory_space<vmem>>, vector<8x8xf32>
      %155 = vector.broadcast %153 : vector<8x1xf32> to vector<8x8xf32>
      %156 = arith.mulf %154, %155 : vector<8x8xf32>
      %157 = arith.truncf %156 : vector<8x8xf32> to vector<8x8xbf16>
      %c0_117 = arith.constant 0 : index
      %c0_118 = arith.constant 0 : index
      %c0_119 = arith.constant 0 : index
      %158 = vector.load %arg6[%c0_117, %c0_118, %c0_119] : memref<1x8x32xbf16, #tpu.memory_space<vmem>>, vector<1x8x8xbf16>
      %159 = vector.shape_cast %158 : vector<1x8x8xbf16> to vector<8x8xbf16>
      %160 = vector.shape_cast %157 : vector<8x8xbf16> to vector<1x8x8xbf16>
      tpu.vector_store %arg6[%c0_117, %c0_118, %c0_119], %160 {strides = array<i32>} : memref<1x8x32xbf16, #tpu.memory_space<vmem>>, vector<1x8x8xbf16>,
      %c1_120 = arith.constant 1 : index
      %c0_121 = arith.constant 0 : index
      %c0_122 = arith.constant 0 : index
      %161 = vector.load %arg8[%c1_120, %c0_121, %c0_122] : memref<4x8x1xf32, #tpu.memory_space<vmem>>, vector<1x8x1xf32>
      %162 = vector.shape_cast %161 : vector<1x8x1xf32> to vector<8x1xf32>
      %cst_123 = arith.constant 1.000000e+00 : f32
      %163 = vector.broadcast %cst_123 : f32 to vector<8x1xf32>
      %164 = arith.divf %163, %162 : vector<8x1xf32>
      %c0_124 = arith.constant 0 : index
      %c8_125 = arith.constant 8 : index
      %165 = vector.load %arg9[%c0_124, %c8_125] : memref<8x32xf32, #tpu.memory_space<vmem>>, vector<8x8xf32>
      %166 = vector.broadcast %164 : vector<8x1xf32> to vector<8x8xf32>
      %167 = arith.mulf %165, %166 : vector<8x8xf32>
      %168 = arith.truncf %167 : vector<8x8xf32> to vector<8x8xbf16>
      %c0_126 = arith.constant 0 : index
      %c0_127 = arith.constant 0 : index
      %c8_128 = arith.constant 8 : index
      %169 = vector.load %arg6[%c0_126, %c0_127, %c8_128] : memref<1x8x32xbf16, #tpu.memory_space<vmem>>, vector<1x8x8xbf16>
      %170 = vector.shape_cast %169 : vector<1x8x8xbf16> to vector<8x8xbf16>
      %171 = vector.shape_cast %168 : vector<8x8xbf16> to vector<1x8x8xbf16>
      tpu.vector_store %arg6[%c0_126, %c0_127, %c8_128], %171 {strides = array<i32>} : memref<1x8x32xbf16, #tpu.memory_space<vmem>>, vector<1x8x8xbf16>,
      %c2_129 = arith.constant 2 : index
      %c0_130 = arith.constant 0 : index
      %c0_131 = arith.constant 0 : index
      %172 = vector.load %arg8[%c2_129, %c0_130, %c0_131] : memref<4x8x1xf32, #tpu.memory_space<vmem>>, vector<1x8x1xf32>
      %173 = vector.shape_cast %172 : vector<1x8x1xf32> to vector<8x1xf32>
      %cst_132 = arith.constant 1.000000e+00 : f32
      %174 = vector.broadcast %cst_132 : f32 to vector<8x1xf32>
      %175 = arith.divf %174, %173 : vector<8x1xf32>
      %c0_133 = arith.constant 0 : index
      %c16_134 = arith.constant 16 : index
      %176 = vector.load %arg9[%c0_133, %c16_134] : memref<8x32xf32, #tpu.memory_space<vmem>>, vector<8x8xf32>
      %177 = vector.broadcast %175 : vector<8x1xf32> to vector<8x8xf32>
      %178 = arith.mulf %176, %177 : vector<8x8xf32>
      %179 = arith.truncf %178 : vector<8x8xf32> to vector<8x8xbf16>
      %c0_135 = arith.constant 0 : index
      %c0_136 = arith.constant 0 : index
      %c16_137 = arith.constant 16 : index
      %180 = vector.load %arg6[%c0_135, %c0_136, %c16_137] : memref<1x8x32xbf16, #tpu.memory_space<vmem>>, vector<1x8x8xbf16>
      %181 = vector.shape_cast %180 : vector<1x8x8xbf16> to vector<8x8xbf16>
      %182 = vector.shape_cast %179 : vector<8x8xbf16> to vector<1x8x8xbf16>
      tpu.vector_store %arg6[%c0_135, %c0_136, %c16_137], %182 {strides = array<i32>} : memref<1x8x32xbf16, #tpu.memory_space<vmem>>, vector<1x8x8xbf16>,
      %c3_138 = arith.constant 3 : index
      %c0_139 = arith.constant 0 : index
      %c0_140 = arith.constant 0 : index
      %183 = vector.load %arg8[%c3_138, %c0_139, %c0_140] : memref<4x8x1xf32, #tpu.memory_space<vmem>>, vector<1x8x1xf32>
      %184 = vector.shape_cast %183 : vector<1x8x1xf32> to vector<8x1xf32>
      %cst_141 = arith.constant 1.000000e+00 : f32
      %185 = vector.broadcast %cst_141 : f32 to vector<8x1xf32>
      %186 = arith.divf %185, %184 : vector<8x1xf32>
      %c0_142 = arith.constant 0 : index
      %c24_143 = arith.constant 24 : index
      %187 = vector.load %arg9[%c0_142, %c24_143] : memref<8x32xf32, #tpu.memory_space<vmem>>, vector<8x8xf32>
      %188 = vector.broadcast %186 : vector<8x1xf32> to vector<8x8xf32>
      %189 = arith.mulf %187, %188 : vector<8x8xf32>
      %190 = arith.truncf %189 : vector<8x8xf32> to vector<8x8xbf16>
      %c0_144 = arith.constant 0 : index
      %c0_145 = arith.constant 0 : index
      %c24_146 = arith.constant 24 : index
      %191 = vector.load %arg6[%c0_144, %c0_145, %c24_146] : memref<1x8x32xbf16, #tpu.memory_space<vmem>>, vector<1x8x8xbf16>
      %192 = vector.shape_cast %191 : vector<1x8x8xbf16> to vector<8x8xbf16>
      %193 = vector.shape_cast %190 : vector<8x8xbf16> to vector<1x8x8xbf16>
      tpu.vector_store %arg6[%c0_144, %c0_145, %c24_146], %193 {strides = array<i32>} : memref<1x8x32xbf16, #tpu.memory_space<vmem>>, vector<1x8x8xbf16>,
    } else {
    }
    return
  }
  func.func @transform_0(%arg0: i32, %arg1: i32, %arg2: i32) -> (i32, i32, i32) {
    %c0_i32 = arith.constant 0 : i32
    %c0_i32_0 = arith.constant 0 : i32
    return %arg0, %arg1, %c0_i32 : i32, i32, i32
  }
  func.func @transform_1(%arg0: i32, %arg1: i32, %arg2: i32) -> (i32, i32, i32) {
    %c0_i32 = arith.constant 0 : i32
    %c0_i32_0 = arith.constant 0 : i32
    return %arg0, %arg2, %c0_i32 : i32, i32, i32
  }
  func.func @transform_2(%arg0: i32, %arg1: i32, %arg2: i32) -> (i32, i32, i32) {
    %c0_i32 = arith.constant 0 : i32
    %c0_i32_0 = arith.constant 0 : i32
    return %arg0, %arg2, %c0_i32 : i32, i32, i32
  }
  func.func @transform_3(%arg0: i32, %arg1: i32, %arg2: i32) -> (i32, i32, i32) {
    %c0_i32 = arith.constant 0 : i32
    %c0_i32_0 = arith.constant 0 : i32
    return %arg0, %arg1, %c0_i32 : i32, i32, i32
  }
}

</mosaic_0001>

<bundles_post_ra>
// kernel: multi_head_attention.9
= control target key start
LH: loop header
LB: loop body
LE: loop exit
PB: predicated region body
PF: predicated region fallthrough
CT: control target
= control target key end

     0   :  { %vm36_vm0 = vcmask 261120   ;;  %vm76_vm1 = vcmask 523520   ;;  %s139_s1 = inlined_call_operand.vmem [shape: bf16[32,32], index: 1, kind: input, shape index: {}]   ;;  %s140_s2 = inlined_call_operand.vmem [shape: f32[1,32], index: 2, kind: input, shape index: {}]   ;;  %s141_s0 = inlined_call_operand.vmem [shape: bf16[2,8,32], index: 0, kind: input, shape index: {}]   ;;  %s142_s3 = inlined_call_operand.vmem [shape: f32[8,64], index: 3, kind: output, shape index: {}]  }
   0x1   :  { %v94_v0 = vld [vmem:[%s139_s1 + $0x8] sm:$0xff]  ;;  %v93_v1 = vld [vmem:[%s139_s1] sm:$0xff]  ;;  %s97_s1 = smov 32  }
   0x2   :  { %65 = vmatpush.bf16.msra.mxu1 %v94_v0  ;;  %46 = vmatpush.bf16.msra.mxu0 %v94_v0  ;;  %v91_v2 = vld [vmem:[%s141_s0 + $0x4] sm:$0xf]  ;;  %v20_v3 = vld [vmem:[%s141_s0] sm:$0xf] }
   0x3   :  { %v96_v4 = vld [vmem:[%s140_s2] ss:$0 sm:$0xff] }
   0x6   :  { %66 = vmatpush.bf16.msra.mxu1 %v93_v1  ;;  %47 = vmatpush.bf16.msra.mxu0 %v93_v1 }
   0x9   :  { %92 = vmatmul.msk.bf16.vlgmr.msra.gmra.mxu1 %vm36_vm0, %v91_v2  ;;  %90 = vmatmul.msk.bf16.vlgmr.msra.gmra.mxu0 %vm36_vm0, %v20_v3 }
  0x86   :  { %v68_v5 = vpop.f32.mrf.mxu1  ;;  %v49_v6 = vpop.f32.mrf.mxu0 }
  0x87   :  { %v69_v7 = vadd.f32 %v96_v4, %v68_v5  ;;  %v50_v8 = vadd.f32 %v96_v4, %v49_v6 }
  0x89   :  { %73 = vrot.lane.b32.xlu0 %v69_v7, %s97_s1  ;;  %53 = vst.msk [vmem:[%s142_s3] sm:$0xff] %vm36_vm0, %v50_v8 }
  0x8e   :  { %v70_v9 = vpop.f32.mrf.mxu1  ;;  %v51_v10 = vpop.f32.mrf.mxu0 }
  0xfb   :  { %v74_v11 = vpop.permute.xlu0 %73 }
  0xfc   :  { %77 = vst.msk [vmem:[%s142_s3] sm:$0xff] %vm76_vm1, %v74_v11 }

// kernel: multi_head_attention.6
= control target key start
LH: loop header
LB: loop body
LE: loop exit
PB: predicated region body
PF: predicated region fallthrough
CT: control target
= control target key end

     0   :  { %vm56_vm0 = vcmask 1041409   ;;  %vm59_vm1 = vcmask 1042434   ;;  %vm62_vm2 = vcmask 1043459   ;;  %vm65_vm3 = vcmask 1044484   ;;  %s292_s1 = inlined_call_operand.vmem [shape: bf16[32,32], index: 1, kind: input, shape index: {}]   ;;  %s293_s0 = inlined_call_operand.vmem [shape: f32[8,2,32], index: 0, kind: input, shape index: {}]   ;;  %s294_s2 = inlined_call_operand.vmem [shape: f32[1,32], index: 2, kind: input, shape index: {}]   ;;  %s295_s3 = inlined_call_operand.vmem [shape: bf16[2,8,32], index: 3, kind: output, shape index: {}]  }
   0x1   :  { %v191_v0 = vld [vmem:[%s292_s1 + $0x8] sm:$0xff]  ;;  %v190_v1 = vld [vmem:[%s292_s1] sm:$0xff]  ;;  %vm68_vm4 = vcmask 1045509   ;;  %vm71_vm5 = vcmask 1046534   ;;  %vm74_vm6 = vcmask 1047559   ;;  %vm89_vm7 = vcmask 261120  }
   0x2   :  { %v20_v2 = vld [vmem:[%s293_s0] sm:$0x1]  ;;  %v21_v3 = vld [vmem:[%s293_s0 + $0x2] sm:$0x1]  ;;  %v22_v4 = vld [vmem:[%s293_s0 + $0x4] sm:$0x1]  ;;  %99 = vmatpush.bf16.msra.mxu0 %v191_v0  ;;  %165 = vmatpush.bf16.msra.mxu1 %v191_v0 }
   0x3   :  { %v23_v5 = vld [vmem:[%s293_s0 + $0x6] sm:$0x1]  ;;  %v28_v6 = vpack.c.bf16 %v20_v2, %v20_v2  ;;  %v24_v7 = vld [vmem:[%s293_s0 + $0x8] sm:$0x1]  ;;  %v25_v8 = vld [vmem:[%s293_s0 + $0xa] sm:$0x1]  ;;  %v29_v10 = vpack.c.bf16 %v21_v3, %v21_v3  ;;  %v30_v11 = vpack.c.bf16 %v22_v4, %v22_v4 }
   0x4   :  { %v26_v9 = vld [vmem:[%s293_s0 + $0xc] sm:$0x1]  ;;  %v31_v12 = vpack.c.bf16 %v23_v5, %v23_v5  ;;  %v27_v13 = vld [vmem:[%s293_s0 + $0xe] sm:$0x1]  ;;  %v32_v14 = vpack.c.bf16 %v24_v7, %v24_v7  ;;  %v33_v15 = vpack.c.bf16 %v25_v8, %v25_v8  ;;  %v109_v18 = vld [vmem:[%s293_s0 + $0x1] sm:$0x1] }
   0x5   :  { %v34_v16 = vpack.c.bf16 %v26_v9, %v26_v9  ;;  %v47_v17 = vunpack.c.l.b16 %v28_v6  ;;  %v110_v19 = vld [vmem:[%s293_s0 + $0x3] sm:$0x1]  ;;  %v35_v20 = vpack.c.bf16 %v27_v13, %v27_v13  ;;  %v48_v21 = vunpack.c.l.b16 %v29_v10  ;;  %v111_v24 = vld [vmem:[%s293_s0 + $0x5] sm:$0x1]  ;;  %v112_v25 = vld [vmem:[%s293_s0 + $0x7] sm:$0x1] }
   0x6   :  { %v49_v22 = vunpack.c.l.b16 %v30_v11  ;;  %v50_v23 = vunpack.c.l.b16 %v31_v12  ;;  %v113_v26 = vld [vmem:[%s293_s0 + $0x9] sm:$0x1]  ;;  %v51_v27 = vunpack.c.l.b16 %v32_v14  ;;  %v52_v28 = vunpack.c.l.b16 %v33_v15  ;;  %v114_v30 = vld [vmem:[%s293_s0 + $0xb] sm:$0x1]  ;;  %v115_v31 = vld [vmem:[%s293_s0 + $0xd] sm:$0x1]  ;;  %100 = vmatpush.bf16.msra.mxu0 %v190_v1  ;;  %166 = vmatpush.bf16.msra.mxu1 %v190_v1 }
   0x7   :  { %v53_v29 = vunpack.c.l.b16 %v34_v16  ;;  %v54_v32 = vunpack.c.l.b16 %v35_v20  ;;  %v55_v33 = vrot.slane %v48_v21, 7  ;;  %v116_v36 = vld [vmem:[%s293_s0 + $0xf] sm:$0x1]  ;;  %v117_v42 = vpack.c.bf16 %v109_v18, %v109_v18  ;;  %v192_v16 = vld [vmem:[%s294_s2] ss:$0 sm:$0xff] }
   0x8   :  { %v58_v34 = vrot.slane %v49_v22, 6  ;;  %v61_v35 = vrot.slane %v50_v23, 5  ;;  %v64_v37 = vrot.slane %v51_v27, 4  ;;  %v67_v38 = vrot.slane %v52_v28, 3 }
   0x9   :  { %v70_v39 = vrot.slane %v53_v29, 2  ;;  %v57_v40 = vsel %vm56_vm0, %v55_v33, %v47_v17  ;;  %v73_v41 = vrot.slane %v54_v32, 1  ;;  %v118_v43 = vpack.c.bf16 %v110_v19, %v110_v19 }
   0xa   :  { %v60_v44 = vsel %vm59_vm1, %v58_v34, %v57_v40  ;;  %v119_v45 = vpack.c.bf16 %v111_v24, %v111_v24  ;;  %v120_v46 = vpack.c.bf16 %v112_v25, %v112_v25  ;;  %v121_v47 = vpack.c.bf16 %v113_v26, %v113_v26 }
   0xb   :  { %v63_v48 = vsel %vm62_vm2, %v61_v35, %v60_v44  ;;  %v122_v49 = vpack.c.bf16 %v114_v30, %v114_v30  ;;  %v123_v50 = vpack.c.bf16 %v115_v31, %v115_v31  ;;  %v124_v51 = vpack.c.bf16 %v116_v36, %v116_v36 }
   0xc   :  { %v66_v52 = vsel %vm65_vm3, %v64_v37, %v63_v48  ;;  %v133_v53 = vunpack.c.l.b16 %v117_v42  ;;  %v134_v54 = vunpack.c.l.b16 %v118_v43  ;;  %v135_v55 = vunpack.c.l.b16 %v119_v45 }
   0xd   :  { %v69_v56 = vsel %vm68_vm4, %v67_v38, %v66_v52  ;;  %v136_v57 = vunpack.c.l.b16 %v120_v46  ;;  %v137_v58 = vunpack.c.l.b16 %v121_v47  ;;  %v138_v59 = vunpack.c.l.b16 %v122_v49 }
   0xe   :  { %v72_v60 = vsel %vm71_vm5, %v70_v39, %v69_v56  ;;  %v139_v61 = vunpack.c.l.b16 %v123_v50  ;;  %v140_v62 = vunpack.c.l.b16 %v124_v51  ;;  %v141_v63 = vrot.slane %v134_v54, 7 }
   0xf   :  { %v75_v0 = vsel %vm74_vm6, %v73_v41, %v72_v60  ;;  %v143_v1 = vrot.slane %v135_v55, 6  ;;  %v145_v2 = vrot.slane %v136_v57, 5  ;;  %v147_v3 = vrot.slane %v137_v58, 4 }
  0x10   :  { %v76_v4 = vpack.c.b16 %v75_v0, %v75_v0  ;;  %v142_v5 = vsel %vm56_vm0, %v141_v63, %v133_v53  ;;  %v149_v6 = vrot.slane %v138_v59, 3  ;;  %v151_v8 = vrot.slane %v139_v61, 2 }
  0x11   :  { %v144_v7 = vsel %vm59_vm1, %v143_v1, %v142_v5  ;;  %v153_v10 = vrot.slane %v140_v62, 1  ;;  %vm107_vm8 = vcmask 257024  }
  0x12   :  { %187 = vmatmul.msk.bf16.vlgmr.msra.gmra.mxu0 %vm89_vm7, %v76_v4  ;;  %v146_v9 = vsel %vm62_vm2, %v145_v2, %v144_v7 }
  0x13   :  { %v148_v11 = vsel %vm65_vm3, %v147_v3, %v146_v9 }
  0x14   :  { %v150_v12 = vsel %vm68_vm4, %v149_v6, %v148_v11 }
  0x15   :  { %v152_v13 = vsel %vm71_vm5, %v151_v8, %v150_v12 }
  0x16   :  { %v154_v14 = vsel %vm74_vm6, %v153_v10, %v152_v13 }
  0x17   :  { %v155_v15 = vpack.c.b16 %v154_v14, %v154_v14 }
  0x19   :  { %188 = vmatmul.msk.bf16.vlgmr.msra.gmra.mxu1 %vm89_vm7, %v155_v15 }
  0x8f   :  { %v102_v17 = vpop.f32.mrf.mxu0 }
  0x90   :  { %v103_v18 = vadd.f32 %v192_v16, %v102_v17 }
  0x92   :  { %v106_v19 = vpack.c.bf16 %v103_v18, %v103_v18 }
  0x94   :  { %108 = vst.msk [vmem:[%s295_s3] sm:$0xf] %vm107_vm8, %v106_v19 }
  0x96   :  { %v168_v20 = vpop.f32.mrf.mxu1 }
  0x97   :  { %v169_v21 = vadd.f32 %v192_v16, %v168_v20  ;;  %v104_v22 = vpop.f32.mrf.mxu0 }
  0x99   :  { %v172_v23 = vpack.c.bf16 %v169_v21, %v169_v21 }
  0x9b   :  { %189 = vst.msk [vmem:[%s295_s3 + $0x4] sm:$0xf] %vm107_vm8, %v172_v23 }
  0x9e   :  { %v170_v24 = vpop.f32.mrf.mxu1 }

// kernel: multi_head_attention.5
= control target key start
LH: loop header
LB: loop body
LE: loop exit
PB: predicated region body
PF: predicated region fallthrough
CT: control target
= control target key end

     0   :  { %vm56_vm0 = vcmask 1041409   ;;  %vm59_vm1 = vcmask 1042434   ;;  %vm62_vm2 = vcmask 1043459   ;;  %vm65_vm3 = vcmask 1044484   ;;  %s294_s1 = inlined_call_operand.vmem [shape: bf16[32,32], index: 1, kind: input, shape index: {}]   ;;  %s295_s0 = inlined_call_operand.vmem [shape: f32[8,2,32], index: 0, kind: input, shape index: {}]   ;;  %s296_s2 = inlined_call_operand.vmem [shape: f32[1,32], index: 2, kind: input, shape index: {}]   ;;  %s297_s3 = inlined_call_operand.vmem [shape: bf16[2,8,32], index: 3, kind: output, shape index: {}]  }
   0x1   :  { %v193_v0 = vld [vmem:[%s294_s1 + $0x8] sm:$0xff]  ;;  %v192_v1 = vld [vmem:[%s294_s1] sm:$0xff]  ;;  %vm68_vm4 = vcmask 1045509   ;;  %vm71_vm5 = vcmask 1046534   ;;  %vm74_vm6 = vcmask 1047559   ;;  %vm89_vm7 = vcmask 261120  }
   0x2   :  { %v20_v2 = vld [vmem:[%s295_s0] sm:$0x1]  ;;  %v21_v3 = vld [vmem:[%s295_s0 + $0x2] sm:$0x1]  ;;  %v22_v4 = vld [vmem:[%s295_s0 + $0x4] sm:$0x1]  ;;  %99 = vmatpush.bf16.msra.mxu0 %v193_v0  ;;  %166 = vmatpush.bf16.msra.mxu1 %v193_v0 }
   0x3   :  { %v23_v5 = vld [vmem:[%s295_s0 + $0x6] sm:$0x1]  ;;  %v28_v6 = vpack.c.bf16 %v20_v2, %v20_v2  ;;  %v24_v7 = vld [vmem:[%s295_s0 + $0x8] sm:$0x1]  ;;  %v25_v8 = vld [vmem:[%s295_s0 + $0xa] sm:$0x1]  ;;  %v29_v10 = vpack.c.bf16 %v21_v3, %v21_v3  ;;  %v30_v11 = vpack.c.bf16 %v22_v4, %v22_v4 }
   0x4   :  { %v26_v9 = vld [vmem:[%s295_s0 + $0xc] sm:$0x1]  ;;  %v31_v12 = vpack.c.bf16 %v23_v5, %v23_v5  ;;  %v27_v13 = vld [vmem:[%s295_s0 + $0xe] sm:$0x1]  ;;  %v32_v14 = vpack.c.bf16 %v24_v7, %v24_v7  ;;  %v33_v15 = vpack.c.bf16 %v25_v8, %v25_v8  ;;  %v110_v18 = vld [vmem:[%s295_s0 + $0x1] sm:$0x1] }
   0x5   :  { %v34_v16 = vpack.c.bf16 %v26_v9, %v26_v9  ;;  %v47_v17 = vunpack.c.l.b16 %v28_v6  ;;  %v111_v19 = vld [vmem:[%s295_s0 + $0x3] sm:$0x1]  ;;  %v35_v20 = vpack.c.bf16 %v27_v13, %v27_v13  ;;  %v48_v21 = vunpack.c.l.b16 %v29_v10  ;;  %v112_v24 = vld [vmem:[%s295_s0 + $0x5] sm:$0x1]  ;;  %v113_v25 = vld [vmem:[%s295_s0 + $0x7] sm:$0x1] }
   0x6   :  { %v49_v22 = vunpack.c.l.b16 %v30_v11  ;;  %v50_v23 = vunpack.c.l.b16 %v31_v12  ;;  %v114_v26 = vld [vmem:[%s295_s0 + $0x9] sm:$0x1]  ;;  %v51_v27 = vunpack.c.l.b16 %v32_v14  ;;  %v52_v28 = vunpack.c.l.b16 %v33_v15  ;;  %v115_v30 = vld [vmem:[%s295_s0 + $0xb] sm:$0x1]  ;;  %v116_v31 = vld [vmem:[%s295_s0 + $0xd] sm:$0x1]  ;;  %100 = vmatpush.bf16.msra.mxu0 %v192_v1  ;;  %167 = vmatpush.bf16.msra.mxu1 %v192_v1 }
   0x7   :  { %v53_v29 = vunpack.c.l.b16 %v34_v16  ;;  %v54_v32 = vunpack.c.l.b16 %v35_v20  ;;  %v55_v33 = vrot.slane %v48_v21, 7  ;;  %v117_v36 = vld [vmem:[%s295_s0 + $0xf] sm:$0x1]  ;;  %v118_v42 = vpack.c.bf16 %v110_v18, %v110_v18  ;;  %v194_v16 = vld [vmem:[%s296_s2] ss:$0 sm:$0xff] }
   0x8   :  { %v58_v34 = vrot.slane %v49_v22, 6  ;;  %v61_v35 = vrot.slane %v50_v23, 5  ;;  %v64_v37 = vrot.slane %v51_v27, 4  ;;  %v67_v38 = vrot.slane %v52_v28, 3 }
   0x9   :  { %v70_v39 = vrot.slane %v53_v29, 2  ;;  %v57_v40 = vsel %vm56_vm0, %v55_v33, %v47_v17  ;;  %v73_v41 = vrot.slane %v54_v32, 1  ;;  %v119_v43 = vpack.c.bf16 %v111_v19, %v111_v19 }
   0xa   :  { %v60_v44 = vsel %vm59_vm1, %v58_v34, %v57_v40  ;;  %v120_v45 = vpack.c.bf16 %v112_v24, %v112_v24  ;;  %v121_v46 = vpack.c.bf16 %v113_v25, %v113_v25  ;;  %v122_v47 = vpack.c.bf16 %v114_v26, %v114_v26 }
   0xb   :  { %v63_v48 = vsel %vm62_vm2, %v61_v35, %v60_v44  ;;  %v123_v49 = vpack.c.bf16 %v115_v30, %v115_v30  ;;  %v124_v50 = vpack.c.bf16 %v116_v31, %v116_v31  ;;  %v125_v51 = vpack.c.bf16 %v117_v36, %v117_v36 }
   0xc   :  { %v66_v52 = vsel %vm65_vm3, %v64_v37, %v63_v48  ;;  %v134_v53 = vunpack.c.l.b16 %v118_v42  ;;  %v135_v54 = vunpack.c.l.b16 %v119_v43  ;;  %v136_v55 = vunpack.c.l.b16 %v120_v45 }
   0xd   :  { %v69_v56 = vsel %vm68_vm4, %v67_v38, %v66_v52  ;;  %v137_v57 = vunpack.c.l.b16 %v121_v46  ;;  %v138_v58 = vunpack.c.l.b16 %v122_v47  ;;  %v139_v59 = vunpack.c.l.b16 %v123_v49 }
   0xe   :  { %v72_v60 = vsel %vm71_vm5, %v70_v39, %v69_v56  ;;  %v140_v61 = vunpack.c.l.b16 %v124_v50  ;;  %v141_v62 = vunpack.c.l.b16 %v125_v51  ;;  %v142_v63 = vrot.slane %v135_v54, 7 }
   0xf   :  { %v75_v0 = vsel %vm74_vm6, %v73_v41, %v72_v60  ;;  %v144_v1 = vrot.slane %v136_v55, 6  ;;  %v146_v2 = vrot.slane %v137_v57, 5  ;;  %v148_v3 = vrot.slane %v138_v58, 4 }
  0x10   :  { %v76_v4 = vpack.c.b16 %v75_v0, %v75_v0  ;;  %v143_v5 = vsel %vm56_vm0, %v142_v63, %v134_v53  ;;  %v150_v6 = vrot.slane %v139_v59, 3  ;;  %v152_v8 = vrot.slane %v140_v61, 2 }
  0x11   :  { %v145_v7 = vsel %vm59_vm1, %v144_v1, %v143_v5  ;;  %v154_v10 = vrot.slane %v141_v62, 1  ;;  %vm108_vm8 = vcmask 257024  }
  0x12   :  { %189 = vmatmul.msk.bf16.vlgmr.msra.gmra.mxu0 %vm89_vm7, %v76_v4  ;;  %v147_v9 = vsel %vm62_vm2, %v146_v2, %v145_v7 }
  0x13   :  { %v149_v11 = vsel %vm65_vm3, %v148_v3, %v147_v9 }
  0x14   :  { %v151_v12 = vsel %vm68_vm4, %v150_v6, %v149_v11 }
  0x15   :  { %v153_v13 = vsel %vm71_vm5, %v152_v8, %v151_v12 }
  0x16   :  { %v155_v14 = vsel %vm74_vm6, %v154_v10, %v153_v13 }
  0x17   :  { %v156_v15 = vpack.c.b16 %v155_v14, %v155_v14 }
  0x19   :  { %190 = vmatmul.msk.bf16.vlgmr.msra.gmra.mxu1 %vm89_vm7, %v156_v15 }
  0x8f   :  { %v102_v17 = vpop.f32.mrf.mxu0 }
  0x90   :  { %v103_v18 = vadd.f32 %v194_v16, %v102_v17 }
  0x92   :  { %v106_v19 = vmul.f32 0.35355338, %v103_v18 }
  0x94   :  { %v107_v20 = vpack.c.bf16 %v106_v19, %v106_v19 }
  0x96   :  { %109 = vst.msk [vmem:[%s297_s3] sm:$0xf] %vm108_vm8, %v107_v20  ;;  %v169_v21 = vpop.f32.mrf.mxu1 }
  0x97   :  { %v170_v22 = vadd.f32 %v194_v16, %v169_v21  ;;  %v104_v23 = vpop.f32.mrf.mxu0 }
  0x99   :  { %v173_v24 = vmul.f32 0.35355338, %v170_v22 }
  0x9b   :  { %v174_v25 = vpack.c.bf16 %v173_v24, %v173_v24 }
  0x9d   :  { %191 = vst.msk [vmem:[%s297_s3 + $0x4] sm:$0xf] %vm108_vm8, %v174_v25 }
  0x9e   :  { %v171_v26 = vpop.f32.mrf.mxu1 }

// kernel: multi_head_attention.8
= control target key start
LH: loop header
LB: loop body
LE: loop exit
PB: predicated region body
PF: predicated region fallthrough
CT: control target
= control target key end

     0   :  { %s991_s12 = smov 0   ;;  %s993_s13 = smov 0   ;;  %s1152_s0 = inlined_call_operand.vmem [shape: bf16[2,8,32], index: 0, kind: input, shape index: {}]   ;;  %s1153_s1 = inlined_call_operand.vmem [shape: bf16[2,8,32], index: 1, kind: input, shape index: {}]   ;;  %s1154_s2 = inlined_call_operand.vmem [shape: bf16[2,8,32], index: 2, kind: input, shape index: {}]   ;;  %s1155_s3 = inlined_call_operand.vmem [shape: bf16[2,8,32], index: 3, kind: output, shape index: {}]  }
   0x1   :  { %s995_s14 = smov 0  }
   0x2 LB: > { %s32_s15 = sadd.s32 1, %s956_s13  ;;  %p863_p0 = scmp.ge.s32.totalorder %s960_s14, 1  ;;  %s960_s14 = sphi %s995_s14, %s13_s14   ;;  %s956_s13 = sphi %s993_s13, %s1157_s13   ;;  %s952_s12 = sphi %s991_s12, %s1156_s12  }
   0x3   : > { %p34_p1 = scmp.ge.s32.totalorder %s32_s15, 2  ;;  %p190_p2 = scmp.lt.s32.totalorder %s960_s14, 3 }
   0x5   : > { %s1159_s15 = smov (%p34_p1, %s32_s15), 0  ;;  %p191_p3 = pnand %p863_p0, %p190_p2 }
   0x6   : > { %p232_p4 = scmp.lt.s32.totalorder (!%p191_p3), %s952_s12, 1  ;;  %s964_s23 = smov (!%p191_p3), 120  }
   0x7   : > { %194 = sbr.rel (%p191_p3) target bundleno = 1184 (0x4a0), region = 32  ;;  %s966_s24 = smov (!%p191_p3), 112  }
   0x8   : > { %s967_s25 = smov (!%p191_p3), 104   ;;  %s968_s29 = smov (!%p191_p3), 8  }
   0x9   : > { %s969_s30 = smov (!%p191_p3), 16   ;;  %s970_s4 = smov (!%p191_p3), 24  }
   0xc   : > { %s1161_s12 = smov (!%p232_p4, %s952_s12), 1  ;;  %vm279_vm0 = vcmask 64512   ;;  %vm265_vm1 = vcmask 7168   ;;  %v962_v3 = vmov -1e+30   ;;  %v963_v10 = vmov 0  }
   0xd   : > { %s1009_s16 = sshll.u32 %s1161_s12, 2  ;;  %266 = vst.msk [vmem:[#allocation2] sm:$0xff] %vm265_vm1, %v962_v3  ;;  %911 = vset.pattern.permute.xlu1 %v963_v10  ;;  %912 = vset.pattern.permute.xlu2 %v963_v10  ;;  %v965_v11 = vmov 0.0   ;;  %vm327_vm2 = vcmask 1043456   ;;  %vm274_vm3 = vcmask 261120  }
   0xe   : > { %s1015_s19 = scalar_lea.vmem %s1153_s1, %s1009_s16  ;;  %s1023_s22 = scalar_lea.vmem %s1152_s0, %s1009_s16  ;;  %267 = vst.msk [vmem:[#allocation2 + $0x8] sm:$0xff] %vm265_vm1, %v962_v3  ;;  %913 = vset.pattern.permute.xlu0 %v963_v10 }
   0xf   : > { %v277_v0 = vld [vmem:[%s1015_s19] sm:$0xf]  ;;  %268 = vst.msk [vmem:[#allocation2 + $0x10] sm:$0xff] %vm265_vm1, %v962_v3  ;;  %s1067_s28 = scalar_lea.vmem %s1154_s2, %s1009_s16  ;;  %s259_s7 = scalar_lea.vmem %s1155_s3, %s1009_s16 }
  0x10   : > { %v284_v1 = vsel %vm279_vm0, %v277_v0, 0  ;;  %v276_v2 = vld [vmem:[%s1023_s22] sm:$0xf]  ;;  %269 = vst.msk [vmem:[#allocation2 + $0x18] sm:$0xff] %vm265_vm1, %v962_v3 }
  0x11   : > { %293 = vmatpush.bf16.xpose.msra.mxu0 %v284_v1  ;;  %v355_v7 = vld [vmem:[%s1015_s19] sm:$0xf]  ;;  %270 = vst.msk [vmem:[#allocation3] sm:$0xff] %vm265_vm1, %v965_v11 }
  0x12   : > { %v363_v8 = vunpack.c.l.b16 %v355_v7  ;;  %271 = vst.msk [vmem:[#allocation3 + $0x8] sm:$0xff] %vm265_vm1, %v965_v11  ;;  %v452_v12 = vld [vmem:[%s1015_s19] sm:$0xf] }
  0x13   : > { %272 = vst.msk [vmem:[#allocation3 + $0x10] sm:$0xff] %vm265_vm1, %v965_v11  ;;  %v460_v13 = vunpack.c.l.b16 %v452_v12  ;;  %v451_v14 = vld [vmem:[%s1023_s22] sm:$0xf] }
  0x14   : > { %v364_v9 = vpack.c.b16 %v363_v8, %v363_v8  ;;  %273 = vst.msk [vmem:[#allocation3 + $0x18] sm:$0xff] %vm265_vm1, %v965_v11  ;;  %v455_v16 = vunpack.c.l.b16 %v451_v14  ;;  %v548_v18 = vld [vmem:[%s1023_s22] sm:$0xf] }
  0x15   : > { %v461_v15 = vpack.c.b16 %v460_v13, %v460_v13  ;;  %v1046_v19 = vld [vmem:[#allocation2] sm:$0xff]  ;;  %v552_v22 = vunpack.c.l.b16 %v548_v18  ;;  %v387_v61 = vld [vmem:[#allocation2 + $0x8] sm:$0xff]  ;;  %275 = vst.msk [vmem:[#allocation4] sm:$0xff] %vm274_vm3, %v965_v11  ;;  %vm642_vm3 = vcmask 261312  }
  0x16   : > { %v456_v17 = vpack.c.b16 %v455_v16, %v455_v16  ;;  %v354_v21 = vld [vmem:[%s1023_s22] sm:$0xf] }
  0x17   : > { %462 = vrot.lane.b32.xlu2 %v461_v15, %s966_s24  ;;  %v358_v25 = vunpack.c.l.b16 %v354_v21  ;;  %v553_v26 = vpack.c.b16 %v552_v22, %v552_v22  ;;  %v549_v28 = vld [vmem:[%s1015_s19] sm:$0xf]  ;;  %v1092_v3 = vld [vmem:[#allocation2 + $0x18] sm:$0xff] }
  0x18   : > { %868 = vmatmul.msk.bf16.vlgmr.msra.gmra.mxu0 %vm279_vm0, %v276_v2  ;;  %v557_v29 = vunpack.c.l.b16 %v549_v28  ;;  %v278_v33 = vld [vmem:[%s1067_s28] sm:$0xf] }
  0x19   : > { %v359_v27 = vpack.c.b16 %v358_v25, %v358_v25  ;;  %v329_v34 = vsel %vm327_vm2, %v278_v33, 0  ;;  %v356_v56 = vld [vmem:[%s1067_s28] sm:$0xf] }
  0x1a   : > { %v558_v30 = vpack.c.b16 %v557_v29, %v557_v29  ;;  %338 = vmatpush.bf16.msra.mxu1 %v329_v34  ;;  %v413_v58 = vunpack.c.l.b16 %v356_v56  ;;  %v453_v63 = vld [vmem:[%s1067_s28] sm:$0xf] }
  0x1b   : > { %v510_v1 = vunpack.c.l.b16 %v453_v63 }
  0x1c   : > { %v414_v60 = vpack.c.b16 %v413_v58, %v413_v58  ;;  %v344_v11 = vld [vmem:[#allocation4] sm:$0xff] }
  0x1d   : > { %v511_v2 = vpack.c.b16 %v510_v1, %v510_v1 }
  0x1f   : > { %457 = vrot.lane.b32.xlu2 %v456_v17, %s966_s24 }
  0x27   : > { %554 = vrot.lane.b32.xlu2 %v553_v26, %s967_s25 }
  0x71   : > { %v463_v35 = vpop.permute.xlu2 %462 }
  0x72   : > { %v468_v36 = vsel %vm279_vm0, %v463_v35, 0 }
  0x73   : > { %477 = vmatpush.bf16.xpose.msrb.mxu1 %v468_v36 }
  0x79   : > { %v458_v43 = vpop.permute.xlu2 %457 }
  0x81   : > { %v555_v46 = vpop.permute.xlu2 %554 }
  0x95   : > { %v295_v4 = vpop.f32.mrf.mxu0 }
  0x96   : > { %v300_v5 = vsel %vm279_vm0, %v295_v4, -inf }
  0x97   : > { %301 = vmax.xlane.f32.xlu0 %v300_v5 }
  0x9d   : > { %v297_v6 = vpop.f32.mrf.mxu0 }
  0xab   : > { %365 = vrot.lane.b32.xlu0 %v364_v9, %s964_s23  ;;  %v484_v9 = vld [vmem:[#allocation2 + $0x10] sm:$0xff] }
 0x10a   : > { %v302_v20 = vpop.xlane.xlu0 %301 }
 0x10b   : > { %v1051_v23 = vmax.f32 %v1046_v19, %v302_v20 }
 0x10d   : > { %v304_v24 = vsub.f32 %v1046_v19, %v1051_v23  ;;  %353 = vst.msk [vmem:[#allocation2] sm:$0xff] %vm265_vm1, %v1051_v23  ;;  %309 = vperm.xlu1 %911, %v1051_v23  }
 0x10f   : > { %v305_v13 = vmul.f32 1.442695, %v304_v24 }
 0x115   : > { %360 = vrot.lane.b32.xlu1 %v359_v27, %s964_s23 }
 0x11d   : > { %559 = vrot.lane.b32.xlu1 %v558_v30, %s967_s25  ;;  %v366_v31 = vpop.permute.xlu0 %365 }
 0x11e   : > { %v371_v32 = vsel %vm279_vm0, %v366_v31, 0 }
 0x11f   : > { %380 = vmatpush.bf16.xpose.msra.mxu2 %v371_v32 }
 0x17f   : > { %v310_v37 = vpop.permute.xlu1 %309 }
 0x180   : > { %v312_v38 = vsub.f32 %v295_v4, %v310_v37  ;;  %v550_v4 = vld [vmem:[%s1067_s28] sm:$0xf] }
 0x181   : > { %v607_v7 = vunpack.c.l.b16 %v550_v4 }
 0x182   : > { %v313_v39 = vmul.f32 1.442695, %v312_v38 }
 0x183   : > { %v608_v12 = vpack.c.b16 %v607_v7, %v607_v7 }
 0x184   : > { %914 = vpow2.f32 %v313_v39 }
 0x185   : > { %916 = vpow2.f32 %v305_v13 }
 0x187   : > { %v361_v40 = vpop.permute.xlu1 %360 }
 0x188   : > { %870 = vmatmul.msk.bf16.vlgmr.msra.gmra.mxu2 %vm279_vm0, %v361_v40 }
 0x18a   : > { %v915_v41 = vpop.eup %914 }
 0x18b   : > { %v323_v42 = vpack.c.bf16 %v915_v41, %v915_v41  ;;  %v917_v18 = vpop.eup %916  ;;  %v317_v19 = vsel %vm279_vm0, %v915_v41, 0.0 }
 0x18d   : > { %869 = vmatmul.msk.bf16.vlgmr.msra.gmra.mxu1 %vm279_vm0, %v323_v42 }
 0x18f   : > { %v560_v44 = vpop.permute.xlu1 %559 }
 0x190   : > { %v565_v45 = vsel %vm279_vm0, %v560_v44, 0 }
 0x191   : > { %574 = vmatpush.bf16.xpose.msrb.mxu0 %v565_v45 }
 0x198   : > { %874 = vmatmul.msk.bf16.vlgmr.msrb.gmra.mxu0 %vm279_vm0, %v555_v46 }
 0x19d   : > { %872 = vmatmul.msk.bf16.vlgmr.msrb.gmra.mxu1 %vm279_vm0, %v458_v43 }
 0x20a   : > { %v1077_v47 = vpop.f32.mrf.mxu1 }
 0x20b   : > { %v382_v48 = vpop.f32.mrf.mxu2 }
 0x20c   : > { %v388_v49 = vsel %vm279_vm0, %v382_v48, -inf }
 0x20d   : > { %389 = vmax.xlane.f32.xlu1 %v388_v49  ;;  %v315_v49 = vld [vmem:[#allocation3] sm:$0xff] }
 0x212   : > { %v342_v50 = vpop.f32.mrf.mxu1 }
 0x213   : > { %v384_v51 = vpop.f32.mrf.mxu2  ;;  %v316_v50 = vmul.f32 %v917_v18, %v315_v49 }
 0x215   : > { %v1080_v52 = vpop.f32.mrf.mxu0 }
 0x216   : > { %v582_v53 = vsel %vm279_vm0, %v1080_v52, -inf }
 0x217   : > { %583 = vmax.xlane.f32.xlu0 %v582_v53 }
 0x21a   : > { %v1084_v54 = vpop.f32.mrf.mxu1 }
 0x21b   : > { %v485_v55 = vsel %vm279_vm0, %v1084_v54, -inf }
 0x21c   : > { %486 = vmax.xlane.f32.xlu2 %v485_v55 }
 0x21d   : > { %v578_v57 = vpop.f32.mrf.mxu0 }
 0x222   : > { %v481_v59 = vpop.f32.mrf.mxu1 }
 0x226   : > { %415 = vrot.lane.b32.xlu1 %v414_v60, %s964_s23 }
 0x280   : > { %v390_v62 = vpop.xlane.xlu1 %389 }
 0x281   : > { %v391_v0 = vmax.f32 %v387_v61, %v390_v62 }
 0x283   : > { %450 = vst.msk [vmem:[#allocation2 + $0x8] sm:$0xff] %vm265_vm1, %v391_v0  ;;  %397 = vperm.xlu2 %912, %v391_v0   ;;  %v392_v16 = vsub.f32 %v387_v61, %v391_v0  ;;  %v404_v0 = vld [vmem:[#allocation3 + $0x8] sm:$0xff] }
 0x285   : > { %v393_v17 = vmul.f32 1.442695, %v392_v16 }
 0x287   : > { %918 = vpow2.f32 %v393_v17 }
 0x28a   : > { %v584_v5 = vpop.xlane.xlu0 %583 }
 0x28b   : > { %v1096_v6 = vmax.f32 %v1092_v3, %v584_v5  ;;  %512 = vrot.lane.b32.xlu2 %v511_v2, %s966_s24 }
 0x28d   : > { %v586_v8 = vsub.f32 %v1092_v3, %v1096_v6  ;;  %644 = vst.msk [vmem:[#allocation2 + $0x18] sm:$0xff] %vm265_vm1, %v1096_v6  ;;  %591 = vperm.xlu1 %911, %v1096_v6   ;;  %v1109_v20 = vpop.eup %918 }
 0x28e   : > { %v405_v1 = vmul.f32 %v1109_v20, %v404_v0 }
 0x28f   : > { %v487_v10 = vpop.xlane.xlu2 %486  ;;  %v587_v7 = vmul.f32 1.442695, %v586_v8 }
 0x290   : > { %v488_v14 = vmax.f32 %v484_v9, %v487_v10 }
 0x292   : > { %v489_v15 = vsub.f32 %v484_v9, %v488_v14  ;;  %547 = vst.msk [vmem:[#allocation2 + $0x10] sm:$0xff] %vm265_vm1, %v488_v14  ;;  %494 = vperm.xlu0 %913, %v488_v14  }
 0x293   : > { %609 = vrot.lane.b32.xlu2 %v608_v12, %s967_s25  ;;  %v598_v12 = vld [vmem:[#allocation3 + $0x18] sm:$0xff] }
 0x298   : > { %v416_v21 = vpop.permute.xlu1 %415 }
 0x299   : > { %v421_v22 = vsel %vm327_vm2, %v416_v21, 0 }
 0x29a   : > { %430 = vmatpush.bf16.msra.mxu3 %v421_v22 }
 0x29b   : > { %347 = vperm.xlu2 %912, %v917_v18  }
 0x2a3   : > { %439 = vperm.xlu2 %912, %v1109_v20  }
 0x2b7   : > { %318 = vadd.xlane.f32.xlu1 %v317_v19 }
 0x2dd   : > { %v398_v23 = vpop.permute.xlu2 %397 }
 0x2de   : > { %v400_v24 = vsub.f32 %v382_v48, %v398_v23 }
 0x2e0   : > { %v401_v25 = vmul.f32 1.442695, %v400_v24 }
 0x2e2   : > { %920 = vpow2.f32 %v401_v25 }
 0x2e5   : > { %v513_v26 = vpop.permute.xlu2 %512 }
 0x2e6   : > { %v518_v31 = vsel %vm327_vm2, %v513_v26, 0 }
 0x2e7   : > { %527 = vmatpush.bf16.msrb.mxu3 %v518_v31 }
 0x2e8   : > { %v921_v27 = vpop.eup %920 }
 0x2e9   : > { %v406_v28 = vsel %vm279_vm0, %v921_v27, 0.0  ;;  %v411_v29 = vpack.c.bf16 %v921_v27, %v921_v27 }
 0x2ea   : > { %407 = vadd.xlane.f32.xlu0 %v406_v28 }
 0x2eb   : > { %871 = vmatmul.msk.bf16.vlgmr.msra.gmra.mxu3 %vm279_vm0, %v411_v29 }
 0x2ed   : > { %v610_v30 = vpop.permute.xlu2 %609 }
 0x2ee   : > { %v615_v32 = vsel %vm327_vm2, %v610_v30, 0  ;;  %vm545_vm2 = vcmask 195712  }
 0x2ef   : > { %624 = vmatpush.bf16.msrb.mxu2 %v615_v32 }
 0x2f5   : > { %v348_v33 = vpop.permute.xlu2 %347 }
 0x2f6   : > { %v350_v34 = vmul.f32 %v348_v33, %v344_v11 }
 0x2f8   : > { %v351_v35 = vadd.f32 %v350_v34, %v1077_v47  ;;  %v490_v47 = vmul.f32 1.442695, %v489_v15 }
 0x2fa   : > { %352 = vst.msk [vmem:[#allocation4] sm:$0xff] %vm279_vm0, %v351_v35 }
 0x2ff   : > { %v592_v36 = vpop.permute.xlu1 %591 }
 0x300   : > { %v594_v37 = vsub.f32 %v1080_v52, %v592_v36 }
 0x302   : > { %v595_v38 = vmul.f32 1.442695, %v594_v37 }
 0x304   : > { %922 = vpow2.f32 %v595_v38  ;;  %v495_v39 = vpop.permute.xlu0 %494 }
 0x305   : > { %v497_v40 = vsub.f32 %v1084_v54, %v495_v39  ;;  %v440_v39 = vpop.permute.xlu2 %439 }
 0x307   : > { %v498_v41 = vmul.f32 1.442695, %v497_v40  ;;  %v436_v40 = vld [vmem:[#allocation4] sm:$0xff] }
 0x309   : > { %924 = vpow2.f32 %v498_v41  ;;  %v442_v41 = vmul.f32 %v440_v39, %v436_v40 }
 0x30a   : > { %v923_v42 = vpop.eup %922  ;;  %926 = vpow2.f32 %v490_v47  ;;  %v501_v47 = vld [vmem:[#allocation3 + $0x10] sm:$0xff] }
 0x30b   : > { %v600_v43 = vsel %vm279_vm0, %v923_v42, 0.0  ;;  %v605_v44 = vpack.c.bf16 %v923_v42, %v923_v42 }
 0x30c   : > { %601 = vadd.xlane.f32.xlu1 %v600_v43 }
 0x30d   : > { %875 = vmatmul.msk.bf16.vlgmr.msrb.gmra.mxu2 %vm279_vm0, %v605_v44 }
 0x30f   : > { %v925_v45 = vpop.eup %924 }
 0x310   : > { %v508_v46 = vpack.c.bf16 %v925_v45, %v925_v45  ;;  %v1126_v48 = vpop.eup %926  ;;  %v503_v8 = vsel %vm279_vm0, %v925_v45, 0.0 }
 0x312   : > { %873 = vmatmul.msk.bf16.vlgmr.msrb.gmra.mxu3 %vm279_vm0, %v508_v46  ;;  %vm448_vm0 = vcmask 130112  }
 0x325   : > { %536 = vperm.xlu1 %911, %v1126_v48  }
 0x32a   : > { %v319_v51 = vpop.xlane.xlu1 %318 }
 0x32b   : > { %v320_v52 = vadd.f32 %v319_v51, %v316_v50  ;;  %v502_v51 = vmul.f32 %v1126_v48, %v501_v47 }
 0x32d   : > { %322 = vst.msk [vmem:[#allocation3] sm:$0xff] %vm265_vm1, %v320_v52 }
 0x334   : > { %v648_v53 = vld [vmem:[#allocation3] sm:$0xff] }
 0x335   : > { %928 = vrcp.f32 %v648_v53  ;;  %v660_v57 = vand.u32 2147483648, %v648_v53  ;;  %v658_v59 = vand.u32 2147483647, %v648_v53  ;;  %vm654_vm5 = vweird.f32 %v648_v53 }
 0x336   : > { %930 = vpow2.f32 %v587_v7 }
 0x337   : > { %v661_v61 = vor.u32 1.1754944e-38, %v660_v57  ;;  %vm659_vm7 = vcmp.eq.f32.partialorder %v658_v59, 8.507059e+37 }
 0x33b   : > { %v929_v54 = vpop.eup %928 }
 0x33c   : > { %v650_v55 = vmul.f32 %v929_v54, %v648_v53  ;;  %vm655_vm4 = vweird.f32 %v929_v54  ;;  %v931_v10 = vpop.eup %930 }
 0x33d   : > { %vm656_vm6 = vmor %vm654_vm5, %vm655_vm4  ;;  %v599_v13 = vmul.f32 %v931_v10, %v598_v12  ;;  %vm698_vm5 = vcmask 126016  }
 0x33e   : > { %v651_v56 = vsub.f32 1.0, %v650_v55 }
 0x340   : > { %v652_v58 = vmul.f32 %v929_v54, %v651_v56 }
 0x342   : > { %v653_v60 = vadd.f32 %v929_v54, %v652_v58 }
 0x344   : > { %v657_v62 = vsel %vm656_vm6, %v929_v54, %v653_v60 }
 0x345   : > { %v662_v63 = vsel %vm659_vm7, %v661_v61, %v657_v62 }
 0x346   : > { %667 = vperm.xlu1 %911, %v662_v63  }
 0x35d   : > { %v408_v2 = vpop.xlane.xlu0 %407 }
 0x35e   : > { %v409_v4 = vadd.f32 %v408_v2, %v405_v1 }
 0x360   : > { %410 = vst.msk [vmem:[#allocation3 + $0x8] sm:$0xff] %vm265_vm1, %v409_v4 }
 0x367   : > { %v674_v16 = vld [vmem:[#allocation3 + $0x8] sm:$0xff] }
 0x368   : > { %932 = vrcp.f32 %v674_v16  ;;  %v686_v28 = vand.u32 2147483648, %v674_v16  ;;  %vm680_vm9 = vweird.f32 %v674_v16  ;;  %v684_v29 = vand.u32 2147483647, %v674_v16 }
 0x36a   : > { %v687_v32 = vor.u32 1.1754944e-38, %v686_v28  ;;  %vm685_vm11 = vcmp.eq.f32.partialorder %v684_v29, 8.507059e+37 }
 0x36e   : > { %v432_v5 = vpop.f32.mrf.mxu3  ;;  %v933_v18 = vpop.eup %932 }
 0x36f   : > { %444 = vrot.lane.b32.xlu2 %v432_v5, %s968_s29  ;;  %v676_v19 = vmul.f32 %v933_v18, %v674_v16  ;;  %vm681_vm8 = vweird.f32 %v933_v18 }
 0x370   : > { %vm682_vm10 = vmor %vm680_vm9, %vm681_vm8  ;;  %vm724_vm9 = vcmask 191616  }
 0x371   : > { %v677_v3 = vsub.f32 1.0, %v676_v19 }
 0x373   : > { %v678_v23 = vmul.f32 %v933_v18, %v677_v3 }
 0x375   : > { %v679_v26 = vadd.f32 %v933_v18, %v678_v23 }
 0x376   : > { %v434_v9 = vpop.f32.mrf.mxu3 }
 0x377   : > { %v683_v30 = vsel %vm682_vm10, %v933_v18, %v679_v26  ;;  %vm750_vm10 = vcmask 257216  }
 0x378   : > { %v688_v11 = vsel %vm685_vm11, %v687_v32, %v683_v30 }
 0x37f   : > { %v602_v14 = vpop.xlane.xlu1 %601 }
 0x380   : > { %v603_v15 = vadd.f32 %v602_v14, %v599_v13 }
 0x382   : > { %604 = vst.msk [vmem:[#allocation3 + $0x18] sm:$0xff] %vm265_vm1, %v603_v15 }
 0x389   : > { %v726_v17 = vld [vmem:[#allocation3 + $0x18] sm:$0xff] }
 0x38a   : > { %934 = vrcp.f32 %v726_v17  ;;  %v738_v34 = vand.u32 2147483648, %v726_v17  ;;  %vm732_vm13 = vweird.f32 %v726_v17  ;;  %v736_v35 = vand.u32 2147483647, %v726_v17 }
 0x38c   : > { %v739_v37 = vor.u32 1.1754944e-38, %v738_v34  ;;  %vm737_vm15 = vcmp.eq.f32.partialorder %v736_v35, 8.507059e+37 }
 0x390   : > { %v626_v20 = vpop.f32.mrf.mxu2  ;;  %v935_v6 = vpop.eup %934 }
 0x391   : > { %v728_v24 = vmul.f32 %v935_v6, %v726_v17  ;;  %vm733_vm12 = vweird.f32 %v935_v6 }
 0x392   : > { %vm734_vm14 = vmor %vm732_vm13, %vm733_vm12 }
 0x393   : > { %v729_v27 = vsub.f32 1.0, %v728_v24 }
 0x395   : > { %v529_v21 = vpop.f32.mrf.mxu3  ;;  %v730_v31 = vmul.f32 %v935_v6, %v729_v27 }
 0x396   : > { %541 = vrot.lane.b32.xlu0 %v529_v21, %s969_s30 }
 0x397   : > { %v731_v33 = vadd.f32 %v935_v6, %v730_v31  ;;  %v537_v45 = vpop.permute.xlu1 %536 }
 0x398   : > { %v628_v22 = vpop.f32.mrf.mxu2  ;;  %504 = vadd.xlane.f32.xlu2 %v503_v8 }
 0x399   : > { %v735_v36 = vsel %vm734_vm14, %v935_v6, %v731_v33 }
 0x39a   : > { %v740_v38 = vsel %vm737_vm15, %v739_v37, %v735_v36 }
 0x39d   : > { %v531_v25 = vpop.f32.mrf.mxu3 }
 0x39e   : > { %638 = vrot.lane.b32.xlu0 %v626_v20, %s970_s4 }
 0x3a6   : > { %693 = vperm.xlu0 %913, %v688_v11  }
 0x3ae   : > { %745 = vperm.xlu0 %913, %v740_v38  }
 0x3b0   : > { %633 = vperm.xlu2 %912, %v931_v10  }
 0x3b8   : > { %v668_v62 = vpop.permute.xlu1 %667 }
 0x3c9   : > { %v445_v42 = vpop.permute.xlu2 %444 }
 0x3ca   : > { %v447_v43 = vadd.f32 %v445_v42, %v442_v41 }
 0x3cc   : > { %449 = vst.msk [vmem:[#allocation4] sm:$0xff] %vm448_vm0, %v447_v43 }
 0x3d3   : > { %v533_v44 = vld [vmem:[#allocation4] sm:$0xff] }
 0x3d4   : > { %v539_v46 = vmul.f32 %v537_v45, %v533_v44 }
 0x408   : > { %v542_v49 = vpop.permute.xlu0 %541 }
 0x409   : > { %v544_v50 = vadd.f32 %v542_v49, %v539_v46 }
 0x40b   : > { %546 = vst.msk [vmem:[#allocation4] sm:$0xff] %vm545_vm2, %v544_v50  ;;  %v505_v52 = vpop.xlane.xlu2 %504 }
 0x40c   : > { %v506_v53 = vadd.f32 %v505_v52, %v502_v51 }
 0x40e   : > { %507 = vst.msk [vmem:[#allocation3 + $0x10] sm:$0xff] %vm265_vm1, %v506_v53  ;;  %vm672_vm1 = vcmask 60416  }
 0x410   : > { %v639_v57 = vpop.permute.xlu0 %638 }
 0x412   : > { %v630_v54 = vld [vmem:[#allocation4] sm:$0xff] }
 0x413   : > { %v634_v55 = vpop.permute.xlu2 %633 }
 0x414   : > { %v636_v56 = vmul.f32 %v634_v55, %v630_v54 }
 0x415   : > { %v700_v58 = vld [vmem:[#allocation3 + $0x10] sm:$0xff] }
 0x416   : > { %v641_v59 = vadd.f32 %v639_v57, %v636_v56  ;;  %936 = vrcp.f32 %v700_v58  ;;  %v712_v4 = vand.u32 2147483648, %v700_v58  ;;  %v710_v7 = vand.u32 2147483647, %v700_v58 }
 0x417   : > { %vm706_vm6 = vweird.f32 %v700_v58 }
 0x418   : > { %643 = vst.msk [vmem:[#allocation4] sm:$0xff] %vm642_vm3, %v641_v59  ;;  %v694_v48 = vpop.permute.xlu0 %693  ;;  %v713_v13 = vor.u32 1.1754944e-38, %v712_v4  ;;  %vm711_vm8 = vcmp.eq.f32.partialorder %v710_v7, 8.507059e+37 }
 0x41c   : > { %v937_v60 = vpop.eup %936 }
 0x41d   : > { %v702_v61 = vmul.f32 %v937_v60, %v700_v58  ;;  %vm707_vm4 = vweird.f32 %v937_v60 }
 0x41e   : > { %vm708_vm7 = vmor %vm706_vm6, %vm707_vm4 }
 0x41f   : > { %v664_v63 = vld [vmem:[#allocation4] sm:$0xff]  ;;  %v703_v0 = vsub.f32 1.0, %v702_v61 }
 0x420   : > { %v670_v1 = vmul.f32 %v668_v62, %v664_v63  ;;  %v696_v2 = vmul.f32 %v694_v48, %v664_v63  ;;  %v746_v16 = vpop.permute.xlu0 %745 }
 0x421   : > { %v704_v5 = vmul.f32 %v937_v60, %v703_v0  ;;  %v748_v17 = vmul.f32 %v746_v16, %v664_v63 }
 0x422   : > { %v671_v9 = vpack.c.bf16 %v670_v1, %v670_v1  ;;  %v697_v10 = vpack.c.bf16 %v696_v2, %v696_v2 }
 0x423   : > { %v705_v12 = vadd.f32 %v937_v60, %v704_v5  ;;  %v749_v21 = vpack.c.bf16 %v748_v17, %v748_v17 }
 0x424   : > { %673 = vst.msk [vmem:[%s259_s7] sm:$0xf] %vm672_vm1, %v671_v9 }
 0x425   : > { %699 = vst.msk [vmem:[%s259_s7] sm:$0xf] %vm698_vm5, %v697_v10  ;;  %v709_v14 = vsel %vm708_vm7, %v937_v60, %v705_v12 }
 0x426   : > { %v714_v15 = vsel %vm711_vm8, %v713_v13, %v709_v14 }
 0x427   : > { %719 = vperm.xlu1 %911, %v714_v15  }
 0x499   : > { %v720_v18 = vpop.permute.xlu1 %719 }
 0x49a   : > { %v722_v20 = vmul.f32 %v720_v18, %v664_v63 }
 0x49c   : > { %v723_v19 = vpack.c.bf16 %v722_v20, %v722_v20 }
 0x49e   : > { %725 = vst.msk [vmem:[%s259_s7] sm:$0xf] %vm724_vm9, %v723_v19 }
 0x49f   : > { %751 = vst.msk [vmem:[%s259_s7] sm:$0xf] %vm750_vm10, %v749_v21 }
 0x4a0 PF: > { %s13_s14 = sadd.s32 1, %s960_s14   ;;  %s1156_s12 = smov %s956_s13 }
 0x4a1   : > { %p10_p5 = scmp.ge.s32.totalorder %s13_s14, 4   ;;  %s1157_s13 = smov %s1159_s15 }
 0x4a3   :  { %12 = sbr.rel (!%p10_p5) target bundleno = 2 (0x2), region = 82 }

</bundles_post_ra>
